<compile_context>
chip_gen: v5e
topology: v5e:2x2
jax: 0.10.0
libtpu: 0.0.40
codegen_flags: <defaults>
</compile_context>

<pallas_src>
import functools

import jax
import jax.numpy as jnp
from jax.experimental import pallas as pl
from jax.experimental.pallas import tpu as pltpu


# ----------------------------------------------------------------------------
# Fused forward kernel: one grid step = one (image, row-band) pair
# ----------------------------------------------------------------------------
def _fused_forward_kernel(xcol_ref, mask_ref, wbb_ref, wsq_ref, whead_ref,
                          ball_ref, out_ref, *, W, TH):
    """
    xcol_ref : (1, 1, BW, 9*cin) bf16  im2col of the band + 1-row halo
    mask_ref : (BW, 2*cf)        f32   x-edge masks [x!=0 | x!=W-1] (W-periodic)
    wbb_ref  : (9*cin, cf)       bf16  backbone 3x3 conv weights (im2col layout)
    wsq_ref  : (10, cf, cf)      bf16  [0:9] RPN 3x3 taps, [9] depth-attn 1x1
    whead_ref: (3*cf, SW)        bf16  fused heads, rows = [rpn | feat | attn]
    ball_ref : (1, SW + 3*cf)    f32   biases [head | bb | rpn | attn]
    out_ref  : (1, CW, SW)       bf16  lane-dense head slab for the band
    """
    f32, bf16 = jnp.float32, jnp.bfloat16
    cf = wsq_ref.shape[-1]
    SW = whead_ref.shape[-1]
    BW = (TH + 2) * W                    # band rows incl. 1-row halo top+bottom
    CW = TH * W                          # central (output) rows

    b_head = ball_ref[:, 0:SW]
    b_bb = ball_ref[:, SW:SW + cf]
    b_rpn = ball_ref[:, SW + cf:SW + 2 * cf]
    b_attn = ball_ref[:, SW + 2 * cf:SW + 3 * cf]

    # ---- backbone: 3x3 conv + ReLU as ONE im2col matmul (K = 9*cin) ---------
    xcol = xcol_ref[0, 0]                                        # (BW, 9*cin)
    feat = jnp.maximum(
        jnp.dot(xcol, wbb_ref[...], preferred_element_type=f32) + b_bb, 0.0)

    # Zero the feature halo rows that lie on the true image border so the RPN
    # conv sees SAME zero padding of *features* (not features-of-zero-input).
    t = pl.program_id(1)
    topf = (t != 0).astype(f32)
    botf = (t != pl.num_programs(1) - 1).astype(f32)
    feat = jnp.concatenate(
        [feat[:W] * topf, feat[W:BW - W], feat[BW - W:] * botf], axis=0)

    # ---- RPN hidden: 3x3 conv + ReLU on the central rows --------------------
    # Nine shifted MXU matmuls; row shifts are static slices + zero-extension
    # (exact at the y border), x border handled by the periodic column masks.
    acc = None
    for k in range(9):
        dy, dx = divmod(k, 3)
        dy -= 1
        dx -= 1
        start = W + dy * W + dx
        if start < 0:
            tap = jnp.concatenate(
                [jnp.zeros((-start, cf), f32), feat[:CW + start]], axis=0)
        elif start + CW > BW:
            tap = jnp.concatenate(
                [feat[start:], jnp.zeros((start + CW - BW, cf), f32)], axis=0)
        else:
            tap = feat[start:start + CW]
        if dx == -1:
            tap = tap * mask_ref[0:CW, 0:cf]        # zero outputs at x == 0
        elif dx == 1:
            tap = tap * mask_ref[0:CW, cf:2 * cf]   # zero outputs at x == W-1
        d = jnp.dot(tap.astype(bf16), wsq_ref[k], preferred_element_type=f32)
        acc = d if acc is None else acc + d
    rpn_bf = jnp.maximum(acc + b_rpn, 0.0).astype(bf16)

    # ---- depth-head attention features (1x1 conv + ReLU), central rows ------
    feat_c_bf = feat[W:W + CW].astype(bf16)
    attn_bf = jnp.maximum(
        jnp.dot(feat_c_bf, wsq_ref[9], preferred_element_type=f32) + b_attn,
        0.0).astype(bf16)

    # ---- all heads fused into ONE K=3*cf matmul -> lane-dense 128-wide slab -
    #   cols: [obj(A) | bbox(4A) | class(C) | depth(1) | pad]
    hin = jnp.concatenate([rpn_bf, feat_c_bf, attn_bf], axis=-1)  # (CW, 3*cf)
    slab = jnp.dot(hin, whead_ref[...], preferred_element_type=f32) + b_head
    out_ref[0, :, :] = slab.astype(out_ref.dtype)


# ----------------------------------------------------------------------------
# Synthetic PlaneRCNNConsistency (test-time forward)
# ----------------------------------------------------------------------------
class PlaneRCNNConsistencyPallas:
    def __init__(self, key, c_in=4, c_feat=32, num_anchors=3, num_classes=8,
                 tile_h=8):
        self.c_in, self.c_feat = c_in, c_feat
        self.num_anchors, self.num_classes = num_anchors, num_classes
        self.tile_h = tile_h
        ks = jax.random.split(key, 8)
        f32, bf16 = jnp.float32, jnp.bfloat16

        def w(k, shape, fan_in):
            return jax.random.normal(k, shape, f32) / jnp.sqrt(fan_in)

        # backbone: 3x3 conv (HWIO)
        self.bb_w = w(ks[0], (3, 3, c_in, c_feat), 9 * c_in)
        self.bb_b = jnp.zeros((c_feat,), f32)
        # depth head: 1x1 attn conv + 1x1 depth conv
        self.attn_w = w(ks[1], (c_feat, c_feat), c_feat)
        self.attn_b = jnp.zeros((c_feat,), f32)
        self.depth_w = w(ks[2], (c_feat, 1), c_feat)
        self.depth_b = jnp.zeros((1,), f32)
        # rpn: 3x3 conv + 1x1 objectness + 1x1 bbox deltas
        self.rpn_w = w(ks[3], (3, 3, c_feat, c_feat), 9 * c_feat)
        self.rpn_b = jnp.zeros((c_feat,), f32)
        self.obj_w = w(ks[4], (c_feat, num_anchors), c_feat)
        self.obj_b = jnp.zeros((num_anchors,), f32)
        self.box_w = w(ks[5], (c_feat, 4 * num_anchors), c_feat)
        self.box_b = jnp.zeros((4 * num_anchors,), f32)
        # roi heads: 1x1 class head on concat(features, attn_feats)
        self.cls_w = w(ks[6], (2 * c_feat, num_classes), 2 * c_feat)
        self.cls_b = jnp.zeros((num_classes,), f32)

        # ---- pack everything into 6 fused kernel operands (built once) ------
        A, C = num_anchors, num_classes
        self._col_obj, self._col_box = 0, A
        self._col_cls, self._col_depth = 5 * A, 5 * A + C
        self._n_live = 5 * A + C + 1
        self._slab_width = SW = max(128, ((self._n_live + 127) // 128) * 128)

        whr = jnp.zeros((c_feat, SW), f32)                 # rpn-hidden heads
        whr = whr.at[:, 0:A].set(self.obj_w)
        whr = whr.at[:, A:5 * A].set(self.box_w)
        whf = jnp.zeros((c_feat, SW), f32)                 # feature heads
        whf = whf.at[:, self._col_cls:self._col_cls + C].set(self.cls_w[:c_feat])
        whf = whf.at[:, self._col_depth:self._col_depth + 1].set(self.depth_w)
        wha = jnp.zeros((c_feat, SW), f32)                 # attn heads
        wha = wha.at[:, self._col_cls:self._col_cls + C].set(self.cls_w[c_feat:])
        bh = jnp.zeros((SW,), f32)
        bh = bh.at[0:A].set(self.obj_b)
        bh = bh.at[A:5 * A].set(self.box_b)
        bh = bh.at[self._col_cls:self._col_cls + C].set(self.cls_b)
        bh = bh.at[self._col_depth].set(self.depth_b[0])

        # bf16 MXU weights (accumulation stays f32 inside the kernel)
        self._w_bb = self.bb_w.reshape(9 * c_in, c_feat).astype(bf16)
        self._w_sq = jnp.concatenate(
            [self.rpn_w.reshape(9, c_feat, c_feat), self.attn_w[None]],
            axis=0).astype(bf16)                           # (10, cf, cf)
        self._w_head = jnp.concatenate([whr, whf, wha], axis=0).astype(bf16)
        self._b_all = jnp.concatenate(
            [bh, self.bb_b, self.rpn_b, self.attn_b]).reshape(1, -1)

    def forward_test(self, images_nchw):
        n, c, h, w = images_nchw.shape
        assert c == self.c_in
        cf, cin, SW = self.c_feat, self.c_in, self._slab_width
        TH = min(self.tile_h, h)
        assert h % TH == 0 and (TH * w) % 8 == 0
        nb = h // TH
        HW, CW, BW = h * w, TH * w, (TH + 2) * w

        # NCHW (PyTorch) -> NHWC, im2col in the wrapper (one K=9*cin matmul in
        # the kernel), then band along rows with a 1-row feature halo per band.
        x = jnp.transpose(images_nchw, (0, 2, 3, 1)).astype(jnp.float32)
        x_pad = jnp.pad(x, ((0, 0), (1, 1), (1, 1), (0, 0)))
        cols = [x_pad[:, ky:ky + h, kx:kx + w, :]
                for ky in range(3) for kx in range(3)]
        xcol = jnp.concatenate(cols, axis=-1).reshape(n, HW, 9 * cin)
        xcol = jnp.pad(xcol, ((0, 0), (w, w), (0, 0)))
        bands = jnp.stack(
            [xcol[:, t * CW:t * CW + BW, :] for t in range(nb)], axis=1
        ).astype(jnp.bfloat16)                              # (n, nb, BW, 9*cin)

        # x-edge masks for the RPN conv taps (W-periodic, band independent)
        xi = jnp.arange(BW) % w
        masks = jnp.concatenate(
            [jnp.tile((xi != 0).astype(jnp.float32)[:, None], (1, cf)),
             jnp.tile((xi != w - 1).astype(jnp.float32)[:, None], (1, cf))],
            axis=1)                                         # (BW, 2*cf)

        kernel = functools.partial(_fused_forward_kernel, W=w, TH=TH)
        slab = pl.pallas_call(
            kernel,
            out_shape=jax.ShapeDtypeStruct((n, HW, SW), jnp.bfloat16),
            grid=(n, nb),
            in_specs=[
                pl.BlockSpec((1, 1, BW, 9 * cin), lambda b, t: (b, t, 0, 0)),
                pl.BlockSpec((BW, 2 * cf), lambda b, t: (0, 0)),
                pl.BlockSpec((9 * cin, cf), lambda b, t: (0, 0)),
                pl.BlockSpec((10, cf, cf), lambda b, t: (0, 0, 0)),
                pl.BlockSpec((3 * cf, SW), lambda b, t: (0, 0)),
                pl.BlockSpec((1, SW + 3 * cf), lambda b, t: (0, 0)),
            ],
            out_specs=pl.BlockSpec((1, CW, SW), lambda b, t: (b, t, 0)),
            compiler_params=pltpu.CompilerParams(
                dimension_semantics=("parallel", "parallel"),
                vmem_limit_bytes=48 * 1024 * 1024),
        )(bands, masks, self._w_bb, self._w_sq, self._w_head, self._b_all)

        # single contiguous gather of the 24 live lanes, then split into fields
        live = slab[..., :self._n_live].astype(jnp.float32).reshape(n, h, w, -1)
        A, C = self.num_anchors, self.num_classes
        return {
            "objectness": jax.nn.sigmoid(live[..., 0:A]),
            "bbox_deltas": live[..., A:5 * A],
            "class_logits": live[..., self._col_cls:self._col_cls + C],
            "depth": live[..., self._col_depth],   # result.add_field('depth', depth)
        }


# ----------------------------------------------------------------------------
# Pure-JAX reference (same bf16 matmul-operand rounding points) for validation
# ----------------------------------------------------------------------------
def _bf16_round(x):
    return x.astype(jnp.bfloat16).astype(jnp.float32)


def reference_forward(model, images_nchw):
    hi = jax.lax.Precision.HIGHEST
    x = _bf16_round(jnp.transpose(images_nchw, (0, 2, 3, 1)).astype(jnp.float32))

    def conv3x3(inp, wgt, bias):
        y = jax.lax.conv_general_dilated(
            inp, _bf16_round(wgt), (1, 1), "SAME",
            dimension_numbers=("NHWC", "HWIO", "NHWC"), precision=hi)
        return jnp.maximum(y + bias, 0.0)

    def mm(a, wgt):
        return jnp.dot(a, _bf16_round(wgt), precision=hi)

    features = conv3x3(x, model.bb_w, model.bb_b)
    feat_b = _bf16_round(features)
    rpn_hidden = conv3x3(feat_b, model.rpn_w, model.rpn_b)
    rpn_b = _bf16_round(rpn_hidden)

    objectness = jax.nn.sigmoid(mm(rpn_b, model.obj_w) + model.obj_b)
    bbox_deltas = mm(rpn_b, model.box_w) + model.box_b
    attn = jnp.maximum(mm(feat_b, model.attn_w) + model.attn_b, 0.0)
    attn_b = _bf16_round(attn)
    depth = (mm(feat_b, model.depth_w) + model.depth_b)[..., 0]
    class_logits = (mm(feat_b, model.cls_w[:model.c_feat])
                    + mm(attn_b, model.cls_w[model.c_feat:]) + model.cls_b)
    return {"objectness": objectness, "bbox_deltas": bbox_deltas,
            "class_logits": class_logits, "depth": depth}


# ----------------------------------------------------------------------------
if __name__ == "__main__":
    key = jax.random.PRNGKey(0)
    k_param, k_img = jax.random.split(key)

    BATCH, C_IN, H, W = 2, 4, 16, 16
    images = jax.random.normal(k_img, (BATCH, C_IN, H, W), jnp.float32)

    model = PlaneRCNNConsistencyPallas(k_param, c_in=C_IN)
    fwd = jax.jit(model.forward_test)
    out = fwd(images)
    out = jax.tree_util.tree_map(jax.block_until_ready, out)

    # End-to-end correctness check against a plain-JAX reference with matching
    # bf16 matmul-operand rounding.  The kernel's head slab is stored in bf16,
    # so pre-activation outputs carry one extra bf16 rounding (<= ~0.016 abs).
    ref = reference_forward(model, images)
    tols = {"objectness": 1e-2, "bbox_deltas": 3e-2,
            "class_logits": 3e-2, "depth": 3e-2}
    for name, tol in tols.items():
        err = float(jnp.max(jnp.abs(out[name] - ref[name])))
        assert err < tol, (name, err)

    assert out["objectness"].shape == (BATCH, H, W, model.num_anchors)
    assert out["bbox_deltas"].shape == (BATCH, H, W, 4 * model.num_anchors)
    assert out["class_logits"].shape == (BATCH, H, W, model.num_classes)
    assert out["depth"].shape == (BATCH, H, W)

    print("KERNEL_OK")
</pallas_src>

<mosaic_0001>
module attributes {stable_mosaic.version = 11 : i64} {
  func.func @_fused_forward_kernel(%arg0: i32, %arg1: i32, %arg2: memref<1x1x160x36xbf16, #tpu.memory_space<vmem>>, %arg3: memref<160x64xf32, #tpu.memory_space<vmem>>, %arg4: memref<36x32xbf16, #tpu.memory_space<vmem>>, %arg5: memref<10x32x32xbf16, #tpu.memory_space<vmem>>, %arg6: memref<96x128xbf16, #tpu.memory_space<vmem>>, %arg7: memref<1x224xf32, #tpu.memory_space<vmem>>, %arg8: memref<1x128x128xbf16, #tpu.memory_space<vmem>>) attributes {dimension_semantics = [#tpu.dimension_semantics<parallel>, #tpu.dimension_semantics<parallel>], iteration_bounds = array<i64: 2, 2>, scalar_prefetch = 0 : i64, scratch_operands = 0 : i64, tpu.core_type = #tpu.core_type<tc>, window_params = [{transform_indices = @transform_0, window_bounds = array<i64: 1, 1, 160, 36>}, {pipeline_mode = #tpu.pipeline_mode<synchronous>, transform_indices = @transform_1, window_bounds = array<i64: 160, 64>}, {pipeline_mode = #tpu.pipeline_mode<synchronous>, transform_indices = @transform_2, window_bounds = array<i64: 36, 32>}, {pipeline_mode = #tpu.pipeline_mode<synchronous>, transform_indices = @transform_3, window_bounds = array<i64: 10, 32, 32>}, {pipeline_mode = #tpu.pipeline_mode<synchronous>, transform_indices = @transform_4, window_bounds = array<i64: 96, 128>}, {pipeline_mode = #tpu.pipeline_mode<synchronous>, transform_indices = @transform_5, window_bounds = array<i64: 1, 224>}, {transform_indices = @transform_6, window_bounds = array<i64: 1, 128, 128>}]} {
    %c0 = arith.constant 0 : index
    %c0_0 = arith.constant 0 : index
    %0 = vector.load %arg7[%c0, %c0_0] : memref<1x224xf32, #tpu.memory_space<vmem>>, vector<1x128xf32>
    %c0_1 = arith.constant 0 : index
    %c128 = arith.constant 128 : index
    %1 = vector.load %arg7[%c0_1, %c128] : memref<1x224xf32, #tpu.memory_space<vmem>>, vector<1x32xf32>
    %c0_2 = arith.constant 0 : index
    %c160 = arith.constant 160 : index
    %2 = vector.load %arg7[%c0_2, %c160] : memref<1x224xf32, #tpu.memory_space<vmem>>, vector<1x32xf32>
    %c0_3 = arith.constant 0 : index
    %c192 = arith.constant 192 : index
    %3 = vector.load %arg7[%c0_3, %c192] : memref<1x224xf32, #tpu.memory_space<vmem>>, vector<1x32xf32>
    %c0_4 = arith.constant 0 : index
    %c0_5 = arith.constant 0 : index
    %c0_6 = arith.constant 0 : index
    %c0_7 = arith.constant 0 : index
    %4 = vector.load %arg2[%c0_4, %c0_5, %c0_6, %c0_7] : memref<1x1x160x36xbf16, #tpu.memory_space<vmem>>, vector<1x1x160x36xbf16>
    %5 = vector.shape_cast %4 : vector<1x1x160x36xbf16> to vector<160x36xbf16>
    %c0_8 = arith.constant 0 : index
    %c0_9 = arith.constant 0 : index
    %6 = vector.load %arg4[%c0_8, %c0_9] : memref<36x32xbf16, #tpu.memory_space<vmem>>, vector<36x32xbf16>
    %cst = arith.constant dense<0.000000e+00> : vector<160x32xf32>
    %7 = tpu.matmul %5, %6, %cst {dimension_numbers = #tpu.dot_dimension_numbers<[1], [0], [0], [1], [0, 0, 1, 1], [], []>} : vector<160x36xbf16>, vector<36x32xbf16>, vector<160x32xf32> -> vector<160x32xf32>
    %8 = vector.broadcast %1 : vector<1x32xf32> to vector<160x32xf32>
    %9 = arith.addf %7, %8 : vector<160x32xf32>
    %cst_10 = arith.constant 0.000000e+00 : f32
    %10 = vector.broadcast %cst_10 : f32 to vector<160x32xf32>
    %11 = arith.maximumf %9, %10 : vector<160x32xf32>
    %c0_i32 = arith.constant 0 : i32
    %12 = arith.cmpi ne, %arg1, %c0_i32 : i32
    %13 = arith.extui %12 : i1 to i32
    %14 = arith.sitofp %13 : i32 to f32
    %c1_i32 = arith.constant 1 : i32
    %15 = arith.cmpi ne, %arg1, %c1_i32 : i32
    %16 = arith.extui %15 : i1 to i32
    %17 = arith.sitofp %16 : i32 to f32
    %18 = vector.extract_strided_slice %11 {offsets = [0, 0], sizes = [16, 32], strides = [1, 1]} : vector<160x32xf32> to vector<16x32xf32>
    %19 = vector.broadcast %14 : f32 to vector<16x32xf32>
    %20 = arith.mulf %18, %19 : vector<16x32xf32>
    %21 = vector.extract_strided_slice %11 {offsets = [16, 0], sizes = [128, 32], strides = [1, 1]} : vector<160x32xf32> to vector<128x32xf32>
    %22 = vector.extract_strided_slice %11 {offsets = [144, 0], sizes = [16, 32], strides = [1, 1]} : vector<160x32xf32> to vector<16x32xf32>
    %23 = vector.broadcast %17 : f32 to vector<16x32xf32>
    %24 = arith.mulf %22, %23 : vector<16x32xf32>
    %25 = tpu.concatenate %20, %21, %24 in 0 : vector<16x32xf32>, vector<128x32xf32>, vector<16x32xf32> -> vector<160x32xf32>
    %cst_11 = arith.constant 0.000000e+00 : f32
    %26 = vector.broadcast %cst_11 : f32 to vector<1x32xf32>
    %27 = vector.extract_strided_slice %25 {offsets = [0, 0], sizes = [127, 32], strides = [1, 1]} : vector<160x32xf32> to vector<127x32xf32>
    %28 = tpu.concatenate %26, %27 in 0 : vector<1x32xf32>, vector<127x32xf32> -> vector<128x32xf32>
    %c0_12 = arith.constant 0 : index
    %c0_13 = arith.constant 0 : index
    %29 = vector.load %arg3[%c0_12, %c0_13] : memref<160x64xf32, #tpu.memory_space<vmem>>, vector<128x32xf32>
    %30 = arith.mulf %28, %29 : vector<128x32xf32>
    %31 = arith.truncf %30 : vector<128x32xf32> to vector<128x32xbf16>
    %c0_14 = arith.constant 0 : index
    %c0_15 = arith.constant 0 : index
    %c0_16 = arith.constant 0 : index
    %32 = vector.load %arg5[%c0_14, %c0_15, %c0_16] : memref<10x32x32xbf16, #tpu.memory_space<vmem>>, vector<1x32x32xbf16>
    %33 = vector.shape_cast %32 : vector<1x32x32xbf16> to vector<32x32xbf16>
    %cst_17 = arith.constant dense<0.000000e+00> : vector<128x32xf32>
    %34 = tpu.matmul %31, %33, %cst_17 {dimension_numbers = #tpu.dot_dimension_numbers<[1], [0], [0], [1], [0, 0, 1, 1], [], []>} : vector<128x32xbf16>, vector<32x32xbf16>, vector<128x32xf32> -> vector<128x32xf32>
    %35 = vector.extract_strided_slice %25 {offsets = [0, 0], sizes = [128, 32], strides = [1, 1]} : vector<160x32xf32> to vector<128x32xf32>
    %36 = arith.truncf %35 : vector<128x32xf32> to vector<128x32xbf16>
    %c1 = arith.constant 1 : index
    %c0_18 = arith.constant 0 : index
    %c0_19 = arith.constant 0 : index
    %37 = vector.load %arg5[%c1, %c0_18, %c0_19] : memref<10x32x32xbf16, #tpu.memory_space<vmem>>, vector<1x32x32xbf16>
    %38 = vector.shape_cast %37 : vector<1x32x32xbf16> to vector<32x32xbf16>
    %cst_20 = arith.constant dense<0.000000e+00> : vector<128x32xf32>
    %39 = tpu.matmul %36, %38, %cst_20 {dimension_numbers = #tpu.dot_dimension_numbers<[1], [0], [0], [1], [0, 0, 1, 1], [], []>} : vector<128x32xbf16>, vector<32x32xbf16>, vector<128x32xf32> -> vector<128x32xf32>
    %40 = arith.addf %34, %39 : vector<128x32xf32>
    %41 = vector.extract_strided_slice %25 {offsets = [1, 0], sizes = [128, 32], strides = [1, 1]} : vector<160x32xf32> to vector<128x32xf32>
    %c0_21 = arith.constant 0 : index
    %c32 = arith.constant 32 : index
    %42 = vector.load %arg3[%c0_21, %c32] : memref<160x64xf32, #tpu.memory_space<vmem>>, vector<128x32xf32>
    %43 = arith.mulf %41, %42 : vector<128x32xf32>
    %44 = arith.truncf %43 : vector<128x32xf32> to vector<128x32xbf16>
    %c2 = arith.constant 2 : index
    %c0_22 = arith.constant 0 : index
    %c0_23 = arith.constant 0 : index
    %45 = vector.load %arg5[%c2, %c0_22, %c0_23] : memref<10x32x32xbf16, #tpu.memory_space<vmem>>, vector<1x32x32xbf16>
    %46 = vector.shape_cast %45 : vector<1x32x32xbf16> to vector<32x32xbf16>
    %cst_24 = arith.constant dense<0.000000e+00> : vector<128x32xf32>
    %47 = tpu.matmul %44, %46, %cst_24 {dimension_numbers = #tpu.dot_dimension_numbers<[1], [0], [0], [1], [0, 0, 1, 1], [], []>} : vector<128x32xbf16>, vector<32x32xbf16>, vector<128x32xf32> -> vector<128x32xf32>
    %48 = arith.addf %40, %47 : vector<128x32xf32>
    %49 = vector.extract_strided_slice %25 {offsets = [15, 0], sizes = [128, 32], strides = [1, 1]} : vector<160x32xf32> to vector<128x32xf32>
    %c0_25 = arith.constant 0 : index
    %c0_26 = arith.constant 0 : index
    %50 = vector.load %arg3[%c0_25, %c0_26] : memref<160x64xf32, #tpu.memory_space<vmem>>, vector<128x32xf32>
    %51 = arith.mulf %49, %50 : vector<128x32xf32>
    %52 = arith.truncf %51 : vector<128x32xf32> to vector<128x32xbf16>
    %c3 = arith.constant 3 : index
    %c0_27 = arith.constant 0 : index
    %c0_28 = arith.constant 0 : index
    %53 = vector.load %arg5[%c3, %c0_27, %c0_28] : memref<10x32x32xbf16, #tpu.memory_space<vmem>>, vector<1x32x32xbf16>
    %54 = vector.shape_cast %53 : vector<1x32x32xbf16> to vector<32x32xbf16>
    %cst_29 = arith.constant dense<0.000000e+00> : vector<128x32xf32>
    %55 = tpu.matmul %52, %54, %cst_29 {dimension_numbers = #tpu.dot_dimension_numbers<[1], [0], [0], [1], [0, 0, 1, 1], [], []>} : vector<128x32xbf16>, vector<32x32xbf16>, vector<128x32xf32> -> vector<128x32xf32>
    %56 = arith.addf %48, %55 : vector<128x32xf32>
    %57 = vector.extract_strided_slice %25 {offsets = [16, 0], sizes = [128, 32], strides = [1, 1]} : vector<160x32xf32> to vector<128x32xf32>
    %58 = arith.truncf %57 : vector<128x32xf32> to vector<128x32xbf16>
    %c4 = arith.constant 4 : index
    %c0_30 = arith.constant 0 : index
    %c0_31 = arith.constant 0 : index
    %59 = vector.load %arg5[%c4, %c0_30, %c0_31] : memref<10x32x32xbf16, #tpu.memory_space<vmem>>, vector<1x32x32xbf16>
    %60 = vector.shape_cast %59 : vector<1x32x32xbf16> to vector<32x32xbf16>
    %cst_32 = arith.constant dense<0.000000e+00> : vector<128x32xf32>
    %61 = tpu.matmul %58, %60, %cst_32 {dimension_numbers = #tpu.dot_dimension_numbers<[1], [0], [0], [1], [0, 0, 1, 1], [], []>} : vector<128x32xbf16>, vector<32x32xbf16>, vector<128x32xf32> -> vector<128x32xf32>
    %62 = arith.addf %56, %61 : vector<128x32xf32>
    %63 = vector.extract_strided_slice %25 {offsets = [17, 0], sizes = [128, 32], strides = [1, 1]} : vector<160x32xf32> to vector<128x32xf32>
    %c0_33 = arith.constant 0 : index
    %c32_34 = arith.constant 32 : index
    %64 = vector.load %arg3[%c0_33, %c32_34] : memref<160x64xf32, #tpu.memory_space<vmem>>, vector<128x32xf32>
    %65 = arith.mulf %63, %64 : vector<128x32xf32>
    %66 = arith.truncf %65 : vector<128x32xf32> to vector<128x32xbf16>
    %c5 = arith.constant 5 : index
    %c0_35 = arith.constant 0 : index
    %c0_36 = arith.constant 0 : index
    %67 = vector.load %arg5[%c5, %c0_35, %c0_36] : memref<10x32x32xbf16, #tpu.memory_space<vmem>>, vector<1x32x32xbf16>
    %68 = vector.shape_cast %67 : vector<1x32x32xbf16> to vector<32x32xbf16>
    %cst_37 = arith.constant dense<0.000000e+00> : vector<128x32xf32>
    %69 = tpu.matmul %66, %68, %cst_37 {dimension_numbers = #tpu.dot_dimension_numbers<[1], [0], [0], [1], [0, 0, 1, 1], [], []>} : vector<128x32xbf16>, vector<32x32xbf16>, vector<128x32xf32> -> vector<128x32xf32>
    %70 = arith.addf %62, %69 : vector<128x32xf32>
    %71 = vector.extract_strided_slice %25 {offsets = [31, 0], sizes = [128, 32], strides = [1, 1]} : vector<160x32xf32> to vector<128x32xf32>
    %c0_38 = arith.constant 0 : index
    %c0_39 = arith.constant 0 : index
    %72 = vector.load %arg3[%c0_38, %c0_39] : memref<160x64xf32, #tpu.memory_space<vmem>>, vector<128x32xf32>
    %73 = arith.mulf %71, %72 : vector<128x32xf32>
    %74 = arith.truncf %73 : vector<128x32xf32> to vector<128x32xbf16>
    %c6 = arith.constant 6 : index
    %c0_40 = arith.constant 0 : index
    %c0_41 = arith.constant 0 : index
    %75 = vector.load %arg5[%c6, %c0_40, %c0_41] : memref<10x32x32xbf16, #tpu.memory_space<vmem>>, vector<1x32x32xbf16>
    %76 = vector.shape_cast %75 : vector<1x32x32xbf16> to vector<32x32xbf16>
    %cst_42 = arith.constant dense<0.000000e+00> : vector<128x32xf32>
    %77 = tpu.matmul %74, %76, %cst_42 {dimension_numbers = #tpu.dot_dimension_numbers<[1], [0], [0], [1], [0, 0, 1, 1], [], []>} : vector<128x32xbf16>, vector<32x32xbf16>, vector<128x32xf32> -> vector<128x32xf32>
    %78 = arith.addf %70, %77 : vector<128x32xf32>
    %79 = vector.extract_strided_slice %25 {offsets = [32, 0], sizes = [128, 32], strides = [1, 1]} : vector<160x32xf32> to vector<128x32xf32>
    %80 = arith.truncf %79 : vector<128x32xf32> to vector<128x32xbf16>
    %c7 = arith.constant 7 : index
    %c0_43 = arith.constant 0 : index
    %c0_44 = arith.constant 0 : index
    %81 = vector.load %arg5[%c7, %c0_43, %c0_44] : memref<10x32x32xbf16, #tpu.memory_space<vmem>>, vector<1x32x32xbf16>
    %82 = vector.shape_cast %81 : vector<1x32x32xbf16> to vector<32x32xbf16>
    %cst_45 = arith.constant dense<0.000000e+00> : vector<128x32xf32>
    %83 = tpu.matmul %80, %82, %cst_45 {dimension_numbers = #tpu.dot_dimension_numbers<[1], [0], [0], [1], [0, 0, 1, 1], [], []>} : vector<128x32xbf16>, vector<32x32xbf16>, vector<128x32xf32> -> vector<128x32xf32>
    %84 = arith.addf %78, %83 : vector<128x32xf32>
    %85 = vector.extract_strided_slice %25 {offsets = [33, 0], sizes = [127, 32], strides = [1, 1]} : vector<160x32xf32> to vector<127x32xf32>
    %cst_46 = arith.constant 0.000000e+00 : f32
    %86 = vector.broadcast %cst_46 : f32 to vector<1x32xf32>
    %87 = tpu.concatenate %85, %86 in 0 : vector<127x32xf32>, vector<1x32xf32> -> vector<128x32xf32>
    %c0_47 = arith.constant 0 : index
    %c32_48 = arith.constant 32 : index
    %88 = vector.load %arg3[%c0_47, %c32_48] : memref<160x64xf32, #tpu.memory_space<vmem>>, vector<128x32xf32>
    %89 = arith.mulf %87, %88 : vector<128x32xf32>
    %90 = arith.truncf %89 : vector<128x32xf32> to vector<128x32xbf16>
    %c8 = arith.constant 8 : index
    %c0_49 = arith.constant 0 : index
    %c0_50 = arith.constant 0 : index
    %91 = vector.load %arg5[%c8, %c0_49, %c0_50] : memref<10x32x32xbf16, #tpu.memory_space<vmem>>, vector<1x32x32xbf16>
    %92 = vector.shape_cast %91 : vector<1x32x32xbf16> to vector<32x32xbf16>
    %cst_51 = arith.constant dense<0.000000e+00> : vector<128x32xf32>
    %93 = tpu.matmul %90, %92, %cst_51 {dimension_numbers = #tpu.dot_dimension_numbers<[1], [0], [0], [1], [0, 0, 1, 1], [], []>} : vector<128x32xbf16>, vector<32x32xbf16>, vector<128x32xf32> -> vector<128x32xf32>
    %94 = arith.addf %84, %93 : vector<128x32xf32>
    %95 = vector.broadcast %2 : vector<1x32xf32> to vector<128x32xf32>
    %96 = arith.addf %94, %95 : vector<128x32xf32>
    %cst_52 = arith.constant 0.000000e+00 : f32
    %97 = vector.broadcast %cst_52 : f32 to vector<128x32xf32>
    %98 = arith.maximumf %96, %97 : vector<128x32xf32>
    %99 = arith.truncf %98 : vector<128x32xf32> to vector<128x32xbf16>
    %100 = vector.extract_strided_slice %25 {offsets = [16, 0], sizes = [128, 32], strides = [1, 1]} : vector<160x32xf32> to vector<128x32xf32>
    %101 = arith.truncf %100 : vector<128x32xf32> to vector<128x32xbf16>
    %c9 = arith.constant 9 : index
    %c0_53 = arith.constant 0 : index
    %c0_54 = arith.constant 0 : index
    %102 = vector.load %arg5[%c9, %c0_53, %c0_54] : memref<10x32x32xbf16, #tpu.memory_space<vmem>>, vector<1x32x32xbf16>
    %103 = vector.shape_cast %102 : vector<1x32x32xbf16> to vector<32x32xbf16>
    %cst_55 = arith.constant dense<0.000000e+00> : vector<128x32xf32>
    %104 = tpu.matmul %101, %103, %cst_55 {dimension_numbers = #tpu.dot_dimension_numbers<[1], [0], [0], [1], [0, 0, 1, 1], [], []>} : vector<128x32xbf16>, vector<32x32xbf16>, vector<128x32xf32> -> vector<128x32xf32>
    %105 = vector.broadcast %3 : vector<1x32xf32> to vector<128x32xf32>
    %106 = arith.addf %104, %105 : vector<128x32xf32>
    %cst_56 = arith.constant 0.000000e+00 : f32
    %107 = vector.broadcast %cst_56 : f32 to vector<128x32xf32>
    %108 = arith.maximumf %106, %107 : vector<128x32xf32>
    %109 = arith.truncf %108 : vector<128x32xf32> to vector<128x32xbf16>
    %110 = tpu.concatenate %99, %101, %109 in 1 : vector<128x32xbf16>, vector<128x32xbf16>, vector<128x32xbf16> -> vector<128x96xbf16>
    %c0_57 = arith.constant 0 : index
    %c0_58 = arith.constant 0 : index
    %111 = vector.load %arg6[%c0_57, %c0_58] : memref<96x128xbf16, #tpu.memory_space<vmem>>, vector<96x128xbf16>
    %cst_59 = arith.constant dense<0.000000e+00> : vector<128x128xf32>
    %112 = tpu.matmul %110, %111, %cst_59 {dimension_numbers = #tpu.dot_dimension_numbers<[1], [0], [0], [1], [0, 0, 1, 1], [], []>} : vector<128x96xbf16>, vector<96x128xbf16>, vector<128x128xf32> -> vector<128x128xf32>
    %113 = vector.broadcast %0 : vector<1x128xf32> to vector<128x128xf32>
    %114 = arith.addf %112, %113 : vector<128x128xf32>
    %115 = arith.truncf %114 : vector<128x128xf32> to vector<128x128xbf16>
    %c0_60 = arith.constant 0 : index
    %c0_61 = arith.constant 0 : index
    %c0_62 = arith.constant 0 : index
    %116 = vector.load %arg8[%c0_60, %c0_61, %c0_62] : memref<1x128x128xbf16, #tpu.memory_space<vmem>>, vector<1x128x128xbf16>
    %117 = vector.shape_cast %116 : vector<1x128x128xbf16> to vector<128x128xbf16>
    %118 = vector.shape_cast %115 : vector<128x128xbf16> to vector<1x128x128xbf16>
    tpu.vector_store %arg8[%c0_60, %c0_61, %c0_62], %118 {strides = array<i32>} : memref<1x128x128xbf16, #tpu.memory_space<vmem>>, vector<1x128x128xbf16>,
    return
  }
  func.func @transform_0(%arg0: i32, %arg1: i32) -> (i32, i32, i32, i32) {
    %c0_i32 = arith.constant 0 : i32
    %c0_i32_0 = arith.constant 0 : i32
    %c0_i32_1 = arith.constant 0 : i32
    return %arg0, %arg1, %c0_i32, %c0_i32_0 : i32, i32, i32, i32
  }
  func.func @transform_1(%arg0: i32, %arg1: i32) -> (i32, i32) {
    %c0_i32 = arith.constant 0 : i32
    %c0_i32_0 = arith.constant 0 : i32
    %c0_i32_1 = arith.constant 0 : i32
    return %c0_i32, %c0_i32_0 : i32, i32
  }
  func.func @transform_2(%arg0: i32, %arg1: i32) -> (i32, i32) {
    %c0_i32 = arith.constant 0 : i32
    %c0_i32_0 = arith.constant 0 : i32
    %c0_i32_1 = arith.constant 0 : i32
    return %c0_i32, %c0_i32_0 : i32, i32
  }
  func.func @transform_3(%arg0: i32, %arg1: i32) -> (i32, i32, i32) {
    %c0_i32 = arith.constant 0 : i32
    %c0_i32_0 = arith.constant 0 : i32
    %c0_i32_1 = arith.constant 0 : i32
    %c0_i32_2 = arith.constant 0 : i32
    return %c0_i32, %c0_i32_0, %c0_i32_1 : i32, i32, i32
  }
  func.func @transform_4(%arg0: i32, %arg1: i32) -> (i32, i32) {
    %c0_i32 = arith.constant 0 : i32
    %c0_i32_0 = arith.constant 0 : i32
    %c0_i32_1 = arith.constant 0 : i32
    return %c0_i32, %c0_i32_0 : i32, i32
  }
  func.func @transform_5(%arg0: i32, %arg1: i32) -> (i32, i32) {
    %c0_i32 = arith.constant 0 : i32
    %c0_i32_0 = arith.constant 0 : i32
    %c0_i32_1 = arith.constant 0 : i32
    return %c0_i32, %c0_i32_0 : i32, i32
  }
  func.func @transform_6(%arg0: i32, %arg1: i32) -> (i32, i32, i32) {
    %c0_i32 = arith.constant 0 : i32
    %c0_i32_0 = arith.constant 0 : i32
    return %arg0, %arg1, %c0_i32 : i32, i32, i32
  }
}

</mosaic_0001>

<bundles_post_ra>
// kernel: forward_test.1
= control target key start
LH: loop header
LB: loop body
LE: loop exit
PB: predicated region body
PF: predicated region fallthrough
CT: control target
= control target key end

     0   :  { %s3320_s21 = smov 0   ;;  %s3322_s22 = smov 0   ;;  %s4779_s0 = inlined_call_operand.vmem [shape: bf16[2,2,160,36], index: 0, kind: input, shape index: {}]   ;;  %s4780_s1 = inlined_call_operand.vmem [shape: f32[160,64], index: 1, kind: input, shape index: {}]   ;;  %s4781_s2 = inlined_call_operand.vmem [shape: bf16[36,32], index: 2, kind: input, shape index: {}]   ;;  %s4782_s3 = inlined_call_operand.vmem [shape: bf16[10,32,32], index: 3, kind: input, shape index: {}]   ;;  %s4783_s4 = inlined_call_operand.vmem [shape: bf16[96,128], index: 4, kind: input, shape index: {}]   ;;  %s4784_s5 = inlined_call_operand.vmem [shape: f32[1,224], index: 5, kind: input, shape index: {}]   ;;  %s4785_s6 = inlined_call_operand.vmem [shape: bf16[2,256,128], index: 6, kind: output, shape index: {}]  }
   0x1   :  { %s3324_s23 = smov 0   ;;  %s3326_s24 = smov 0  }
   0x2   :  { %s3328_s25 = smov 0  }
   0x3 LB: > { %s25_s26 = sadd.s32 1, %s3272_s23  ;;  %s28_s27 = sadd.s32 1, %s3276_s24  ;;  %s3280_s25 = sphi %s3328_s25, %s16_s25   ;;  %s3276_s24 = sphi %s3326_s24, %s4856_s24   ;;  %s3272_s23 = sphi %s3324_s23, %s4855_s23   ;;  %s3268_s22 = sphi %s3322_s22, %s4854_s22   ;;  %s3264_s21 = sphi %s3320_s21, %s4853_s21  }
   0x4   : > { %p26_p0 = scmp.ge.s32.totalorder %s25_s26, 2  ;;  %p2810_p1 = scmp.ge.s32.totalorder %s3280_s25, 1 }
   0x5   : > { %p232_p2 = scmp.lt.s32.totalorder %s3280_s25, 5 }
   0x6   : > { %s4858_s26 = smov (%p26_p0, %s25_s26), 0  ;;  %s4860_s27 = smov (!%p26_p0, %s28_s27), %s3276_s24 }
   0x7   : > { %p233_p3 = pnand %p2810_p1, %p232_p2  ;;  %p30_p4 = scmp.ge.s32.totalorder %s4860_s27, 2 }
   0x9   : > { %s4862_s27 = smov (%p30_p4, %s4860_s27), 0  ;;  %236 = sbr.rel (%p233_p3) target bundleno = 968 (0x3c8), region = 44 }
   0xe   : > { %v316_v0 = vld [vmem:[%s4781_s2 + $0x10] sm:$0x3]  ;;  %p270_p5 = scmp.lt.s32.totalorder %s3268_s22, 1  ;;  %p272_p6 = scmp.lt.s32.totalorder %s3264_s21, 1  ;;  %v3359_v2 = vld [vmem:[%s4780_s1] sm:$0xff]  ;;  %v3364_v3 = vld [vmem:[%s4780_s1 + $0x8] sm:$0xff] }
   0xf   : > { %v379_v1 = vunpack.c.l.b16 %v316_v0  ;;  %vm416_vm0 = vcmask 1041408   ;;  %v820_v4 = vrot.slane %v3359_v2, 7  ;;  %vm527_vm1 = vcmask 1040384   ;;  %v3373_v6 = vld [vmem:[%s4780_s1 + $0x10] sm:$0xff]  ;;  %s3282_s14 = smov 96   ;;  %v3114_v11 = vld [vmem:[%s4781_s2 + $0x8] sm:$0xff] }
  0x10   : > { %s4864_s22 = smov (!%p270_p5, %s3268_s22), 1  ;;  %v821_v5 = vrot.slane %v3364_v3, 7  ;;  %v823_v8 = vrot.slane %v3373_v6, 7  ;;  %v3113_v13 = vld [vmem:[%s4781_s2] sm:$0xff]  ;;  %vm385_vm2 = vcmask 293888   ;;  %v3398_v15 = vld [vmem:[%s4780_s1 + $0x18] sm:$0xff] }
  0x11   : > { %v382_v7 = vpack.c.b16 %v379_v1, %v379_v1  ;;  %s273_s12 = scalar_select %p272_p6, %s3264_s21, 1  ;;  %851 = vrot.lane.b32.xlu0 %v820_v4, %s3282_s14  ;;  %v3403_v16 = vld [vmem:[%s4780_s1 + $0x28] sm:$0xff]  ;;  %v3408_v17 = vld [vmem:[%s4780_s1 + $0x30] sm:$0xff]  ;;  %v825_v18 = vrot.slane %v3398_v15, 7  ;;  %v3417_v21 = vld [vmem:[%s4780_s1 + $0x20] sm:$0xff]  ;;  %vm645_vm3 = vcmask 261120  }
  0x12   : > { %s3192_s13 = smul.u32 40, %s4864_s22  ;;  %v824_v10 = vsel %vm527_vm1, %v821_v5, %v823_v8  ;;  %v822_v12 = vsel %vm527_vm1, %v820_v4, %v821_v5  ;;  %v829_v19 = vrot.slane %v3403_v16, 7  ;;  %v831_v20 = vrot.slane %v3408_v17, 7  ;;  %v3422_v22 = vld [vmem:[%s4780_s1 + $0x38] sm:$0xff]  ;;  %v3430_v26 = vld [vmem:[%s4780_s1 + $0x40] sm:$0xff]  ;;  %v3435_v27 = vld [vmem:[%s4780_s1 + $0x48] sm:$0xff] }
  0x13   : > { %v418_v9 = vsel %vm416_vm0, %v382_v7, 0  ;;  %s3191_s15 = smul.u32 20, %s273_s12  ;;  %855 = vrot.lane.b32.xlu1 %v824_v10, %s3282_s14  ;;  %v826_v23 = vsel %vm527_vm1, %v823_v8, %v825_v18  ;;  %v827_v25 = vrot.slane %v3417_v21, 7  ;;  %v833_v29 = vrot.slane %v3422_v22, 7  ;;  %v3452_v35 = vld [vmem:[%s4780_s1 + $0x50] sm:$0xff]  ;;  %v3457_v36 = vld [vmem:[%s4780_s1 + $0x58] sm:$0xff] }
  0x14   : > { %425 = vmatpush.bf16.msra.mxu0 %v418_v9  ;;  %3188 = vmatpush.bf16.msra.mxu1 %v418_v9  ;;  %v832_v24 = vsel %vm527_vm1, %v829_v19, %v831_v20  ;;  %v835_v30 = vrot.slane %v3430_v26, 7  ;;  %v837_v31 = vrot.slane %v3435_v27, 7  ;;  %v3462_v37 = vld [vmem:[%s4780_s1 + $0x60] sm:$0xff]  ;;  %v839_v38 = vrot.slane %v3452_v35, 7  ;;  %v3472_v42 = vld [vmem:[%s4780_s1 + $0x68] sm:$0xff]  ;;  %v3480_v45 = vld [vmem:[%s4780_s1 + $0x70] sm:$0xff] }
  0x15   : > { %s276_s18 = sadd.s32 %s3192_s13, %s3191_s15  ;;  %v828_v28 = vsel %vm527_vm1, %v825_v18, %v827_v25  ;;  %v834_v32 = vsel %vm527_vm1, %v831_v20, %v833_v29  ;;  %v841_v39 = vrot.slane %v3457_v36, 7  ;;  %v843_v40 = vrot.slane %v3462_v37, 7  ;;  %v3485_v46 = vld [vmem:[%s4780_s1 + $0x78] sm:$0xff]  ;;  %v3542_v59 = vld [vmem:[%s4784_s5 + $0x1] ss:$0 sm:$0xff]  ;;  %s3283_s29 = smov 64  }
  0x16   : > { %s2811_s19 = sshll.u32 %s276_s18, 2  ;;  %859 = vrot.lane.b32.xlu2 %v828_v28, %s3282_s14  ;;  %v838_v33 = vsel %vm527_vm1, %v835_v30, %v837_v31  ;;  %v830_v41 = vsel %vm527_vm1, %v827_v25, %v829_v19  ;;  %v840_v43 = vsel %vm527_vm1, %v837_v31, %v839_v38  ;;  %v845_v47 = vrot.slane %v3472_v42, 7  ;;  %v3118_v62 = vld [vmem:[%s4782_s3 + $0x18] sm:$0xff]  ;;  %v3117_v63 = vld [vmem:[%s4782_s3 + $0x10] sm:$0xff]  ;;  %v3116_v0 = vld [vmem:[%s4782_s3 + $0x8] sm:$0xff]  ;;  %p499_p7 = scmp.ne.s32.totalorder %s3264_s21, 0 }
  0x17   : > { %s3391_s7 = scalar_lea.vmem %s4779_s0, %s2811_s19  ;;  %v844_v44 = vsel %vm527_vm1, %v841_v39, %v843_v40  ;;  %v847_v48 = vrot.slane %v3480_v45, 7  ;;  %v849_v49 = vrot.slane %v3485_v46, 7  ;;  %v836_v50 = vsel %vm527_vm1, %v833_v29, %v835_v30  ;;  %761 = vmatpush.bf16.msra.mxu2 %v3116_v0  ;;  %v3115_v4 = vld [vmem:[%s4782_s3] sm:$0xff]  ;;  %v3120_v7 = vld [vmem:[%s4782_s3 + $0x28] sm:$0xff]  ;;  %v3126_v19 = vld [vmem:[%s4782_s3 + $0x58] sm:$0xff]  ;;  %s3284_s11 = smov 32  }
  0x18   : > { %426 = vmatpush.bf16.msra.mxu0 %v3114_v11  ;;  %3189 = vmatpush.bf16.msra.mxu1 %v3114_v11  ;;  %v3103_v14 = vld [vmem:[%s3391_s7] sm:$0xff]  ;;  %v3104_v34 = vld [vmem:[%s3391_s7 + $0x8] sm:$0xff]  ;;  %v846_v51 = vsel %vm527_vm1, %v843_v40, %v845_v47  ;;  %v3105_v53 = vld [vmem:[%s3391_s7 + $0x10] sm:$0xff]  ;;  %v842_v54 = vsel %vm527_vm1, %v839_v38, %v841_v39  ;;  %s500_s17 = scalar_select %p499_p7, 1, 0  ;;  %v3591_v28 = vrot.slane %v3359_v2, 1 }
  0x19   : > { %853 = vrot.lane.b32.xlu0 %v822_v12, %s3282_s14  ;;  %v850_v52 = vsel %vm527_vm1, %v847_v48, %v849_v49  ;;  %v848_v55 = vsel %vm527_vm1, %v845_v47, %v847_v48  ;;  %v3106_v56 = vld [vmem:[%s3391_s7 + $0x18] sm:$0xff]  ;;  %v3107_v57 = vld [vmem:[%s3391_s7 + $0x20] sm:$0xff]  ;;  %v3108_v58 = vld [vmem:[%s3391_s7 + $0x28] sm:$0xff]  ;;  %1044 = vmatpush.bf16.msra.mxu3 %v3120_v7  ;;  %vm1103_vm4 = vcmask 1046528   ;;  %vm933_vm5 = vsmask.f32 7424 }
  0x1a   : > { %v3109_v60 = vld [vmem:[%s3391_s7 + $0x30] sm:$0xff]  ;;  %v3112_v61 = vld [vmem:[%s3391_s7 + $0x48] sm:$0xff]  ;;  %v3110_v1 = vld [vmem:[%s3391_s7 + $0x38] sm:$0xff]  ;;  %s501_s18 = scvt.s32.f32 %s500_s17  ;;  %vm1183_vm6 = vsmask.f32 4352  ;;  %p502_p8 = scmp.ne.s32.totalorder %s3264_s21, 1 }
  0x1b   : > { %857 = vrot.lane.b32.xlu1 %v826_v23, %s3282_s14  ;;  %762 = vmatpush.bf16.msra.mxu2 %v3115_v4  ;;  %v3111_v8 = vld [vmem:[%s3391_s7 + $0x40] sm:$0xff]  ;;  %vm2615_vm7 = vcmask 785408   ;;  %vm2547_vm8 = vcmask 523264  }
  0x1c   : > { %427 = vmatpush.bf16.msra.mxu0 %v3113_v13  ;;  %3190 = vmatpush.bf16.msra.mxu1 %v3113_v13  ;;  %v3119_v11 = vld [vmem:[%s4782_s3 + $0x20] sm:$0xff]  ;;  %v505_v18 = vstv %s501_s18  ;;  %s4043_s13 = scalar_select %p502_p8, 1, 0 }
  0x1d   : > { %1045 = vmatpush.bf16.msra.mxu3 %v3119_v11 }
  0x1e   : > { %861 = vrot.lane.b32.xlu2 %v830_v41, %s3282_s14  ;;  %s504_s15 = scvt.s32.f32 %s4043_s13 }
  0x1f   : > { %2863 = vmatmul.msk.bf16.vlgmr.msra.gmra.mxu0 %vm385_vm2, %v3103_v14  ;;  %2872 = vmatmul.msk.bf16.vlgmr.msra.gmra.mxu1 %vm385_vm2, %v3112_v61 }
  0x20   : > { %676 = vmatpush.bf16.msrb.mxu1 %v3118_v62 }
  0x21   : > { %863 = vrot.lane.b32.xlu0 %v832_v24, %s3282_s14  ;;  %1668 = vmatpush.bf16.msrb.mxu3 %v3126_v19 }
  0x23   : > { %865 = vrot.lane.b32.xlu1 %v834_v32, %s3282_s14 }
  0x24   : > { %677 = vmatpush.bf16.msrb.mxu1 %v3117_v63  ;;  %v3128_v63 = vld [vmem:[%s4782_s3 + $0x68] sm:$0xff] }
  0x25   : > { %1880 = vmatpush.bf16.msrb.mxu0 %v3128_v63  ;;  %v1111_v63 = vrot.slane %v3417_v21, 1 }
  0x26   : > { %867 = vrot.lane.b32.xlu2 %v836_v50, %s3282_s14 }
  0x29   : > { %869 = vrot.lane.b32.xlu0 %v838_v33, %s3282_s14 }
  0x2b   : > { %871 = vrot.lane.b32.xlu1 %v840_v43, %s3282_s14 }
  0x2e   : > { %873 = vrot.lane.b32.xlu2 %v842_v54, %s3282_s14 }
  0x2f   : > { %2864 = vmatmul.msk.bf16.gmra.mxu0 %vm385_vm2, %v3104_v34  ;;  %v1105_v34 = vrot.slane %v3364_v3, 1 }
  0x31   : > { %875 = vrot.lane.b32.xlu0 %v844_v44, %s3282_s14  ;;  %v3610_v54 = vsel %vm1103_vm4, %v3591_v28, %v1105_v34 }
  0x33   : > { %877 = vrot.lane.b32.xlu1 %v846_v51, %s3282_s14 }
  0x36   : > { %879 = vrot.lane.b32.xlu2 %v848_v55, %s3282_s14 }
  0x39   : > { %881 = vrot.lane.b32.xlu0 %v850_v52, %s3282_s14 }
  0x3b   : > { %883 = vrot.lane.b32.xlu1 %v849_v49, %s3282_s14 }
  0x3e   : > { %2081 = vrot.lane.b32.xlu2 %v3359_v2, %s3282_s14 }
  0x3f   : > { %2865 = vmatmul.msk.bf16.gmra.mxu0 %vm385_vm2, %v3105_v53 }
  0x41   : > { %2083 = vrot.lane.b32.xlu0 %v3364_v3, %s3282_s14 }
  0x43   : > { %2085 = vrot.lane.b32.xlu1 %v3373_v6, %s3282_s14 }
  0x46   : > { %2087 = vrot.lane.b32.xlu2 %v3398_v15, %s3282_s14 }
  0x49   : > { %2089 = vrot.lane.b32.xlu0 %v3417_v21, %s3282_s14 }
  0x4b   : > { %2091 = vrot.lane.b32.xlu1 %v3403_v16, %s3282_s14 }
  0x4e   : > { %2093 = vrot.lane.b32.xlu2 %v3408_v17, %s3282_s14 }
  0x4f   : > { %2866 = vmatmul.msk.bf16.gmra.mxu0 %vm385_vm2, %v3106_v56 }
  0x51   : > { %2095 = vrot.lane.b32.xlu0 %v3422_v22, %s3282_s14 }
  0x53   : > { %2097 = vrot.lane.b32.xlu1 %v3430_v26, %s3282_s14 }
  0x56   : > { %2099 = vrot.lane.b32.xlu2 %v3435_v27, %s3282_s14 }
  0x59   : > { %2101 = vrot.lane.b32.xlu0 %v3452_v35, %s3282_s14 }
  0x5b   : > { %2103 = vrot.lane.b32.xlu1 %v3457_v36, %s3282_s14 }
  0x5e   : > { %2105 = vrot.lane.b32.xlu2 %v3462_v37, %s3282_s14 }
  0x5f   : > { %2867 = vmatmul.msk.bf16.gmra.mxu0 %vm385_vm2, %v3107_v57 }
  0x61   : > { %2107 = vrot.lane.b32.xlu0 %v3472_v42, %s3282_s14 }
  0x63   : > { %2327 = vrot.lane.b32.xlu1 %v3542_v59, %s3283_s29 }
  0x66   : > { %2109 = vrot.lane.b32.xlu2 %v3480_v45, %s3282_s14 }
  0x69   : > { %2111 = vrot.lane.b32.xlu0 %v3485_v46, %s3282_s14 }
  0x6b   : > { %2259 = vrot.lane.b32.xlu1 %v3542_v59, %s3282_s14 }
  0x6f   : > { %2868 = vmatmul.msk.bf16.gmra.mxu0 %vm385_vm2, %v3108_v58 }
  0x70   : > { %v3580_v13 = vpop.permute.xlu2 %859 }
  0x78   : > { %v3593_v32 = vpop.permute.xlu2 %861 }
  0x7f   : > { %2869 = vmatmul.msk.bf16.gmra.mxu0 %vm385_vm2, %v3109_v60  ;;  %v1107_v60 = vrot.slane %v3373_v6, 1 }
  0x80   : > { %v3615_v61 = vpop.permute.xlu2 %867 }
  0x83   : > { %v852_v5 = vpop.permute.xlu0 %851 }
  0x85   : > { %v3587_v24 = vpop.permute.xlu1 %855 }
  0x8b   : > { %v3582_v14 = vpop.permute.xlu0 %853 }
  0x8d   : > { %v3606_v52 = vpop.permute.xlu1 %857 }
  0x8f   : > { %2870 = vmatmul.msk.bf16.gmra.mxu0 %vm385_vm2, %v3110_v1 }
  0x93   : > { %v3595_v33 = vpop.permute.xlu0 %863 }
  0x9c   : > { %v429_v9 = vpop.f32.mrf.mxu0 }
  0x9d   : > { %v430_v10 = vadd.f32 %v3542_v59, %v429_v9  ;;  %v3629_v9 = vsel %vm1103_vm4, %v1105_v34, %v1107_v60 }
  0x9f   : > { %v479_v12 = vmax.f32 %v430_v10, 0.0  ;;  %2871 = vmatmul.msk.bf16.gmra.mxu0 %vm385_vm2, %v3111_v8  ;;  %v1109_v10 = vrot.slane %v3398_v15, 1 }
  0xa1   : > { %v506_v20 = vmul.f32 %v505_v18, %v479_v12  ;;  %v3632_v12 = vpop.permute.xlu1 %865 }
  0xa3   : > { %v528_v29 = vrot.slane %v506_v20, 7  ;;  %v902_v49 = vmul.f32 %v852_v5, %v506_v20 }
  0xa4   : > { %v431_v23 = vpop.f32.mrf.mxu0 }
  0xa5   : > { %v432_v25 = vadd.f32 %v3542_v59, %v431_v23  ;;  %v575_v41 = vsel %vm527_vm1, 0.0, %v528_v29 }
  0xa6   : > { %v592_v50 = vmul.f32 %v3359_v2, %v575_v41  ;;  %v3617_v2 = vpop.permute.xlu0 %869 }
  0xa7   : > { %v480_v30 = vmax.f32 %v432_v25, 0.0 }
  0xa9   : > { %v507_v31 = vmul.f32 %v505_v18, %v480_v30 }
  0xab   : > { %v1152_v38 = vmul.f32 %v3591_v28, %v507_v31  ;;  %v620_v39 = vpack.c.bf16 %v507_v31, %v506_v20  ;;  %v529_v40 = vrot.slane %v507_v31, 7  ;;  %v903_v43 = vmul.f32 %v3582_v14, %v507_v31 }
  0xac   : > { %v434_v44 = vpop.f32.mrf.mxu0 }
  0xad   : > { %v435_v47 = vadd.f32 %v3542_v59, %v434_v44  ;;  %2885 = vmatmul.msk.bf16.vlgmr.msrb.gmra.mxu1 %vm645_vm3, %v620_v39  ;;  %v530_v48 = vsel %vm527_vm1, %v528_v29, %v529_v40  ;;  %v919_v55 = vpack.c.bf16 %v903_v43, %v902_v49 }
  0xae   : > { %v593_v51 = vmul.f32 %v3364_v3, %v530_v48  ;;  %v3654_v48 = vpop.permute.xlu2 %873 }
  0xaf   : > { %v481_v53 = vmax.f32 %v435_v47, 0.0  ;;  %v937_v3 = vshll.u32 %v919_v55, 16  ;;  %v935_v43 = vshrl.u32 %v919_v55, 16 }
  0xb0   : > { %v608_v56 = vpack.c.bf16 %v593_v51, %v592_v50  ;;  %v3661_v51 = vpop.permute.xlu0 %875 }
  0xb1   : > { %v1153_v57 = vmul.f32 %v3610_v54, %v481_v53  ;;  %v1527_v58 = vmul.f32 %v852_v5, %v481_v53  ;;  %v1365_v4 = vpack.c.bf16 %v481_v53, %v481_v53  ;;  %v531_v7 = vrot.slane %v481_v53, 7  ;;  %v3127_v5 = vld [vmem:[%s4782_s3 + $0x60] sm:$0xff] }
  0xb2   : > { %2901 = vmatmul.msk.bf16.vlgmr.msra.gmra.mxu2 %vm645_vm3, %v608_v56  ;;  %v939_v11 = vrot.slane %v937_v3, 1  ;;  %v904_v20 = vmul.f32 %v3587_v24, %v481_v53  ;;  %1881 = vmatpush.bf16.msrb.mxu0 %v3127_v5 }
  0xb3   : > { %v1169_v0 = vpack.c.bf16 %v1153_v57, %v1152_v38  ;;  %v1402_v25 = vunpack.c.l.b16 %v1365_v4  ;;  %v532_v29 = vsel %vm527_vm1, %v529_v40, %v531_v7  ;;  %v4787_v4 = vrot.slane %v3403_v16, 1 }
  0xb4   : > { %v436_v62 = vpop.f32.mrf.mxu0  ;;  %v940_v55 = vor.u32 %v939_v11, %v935_v43 }
  0xb5   : > { %v437_v1 = vadd.f32 %v3542_v59, %v436_v62  ;;  %v1188_v3 = vshll.u32 %v1169_v0, 16 }
  0xb7   : > { %v3623_v8 = vmax.f32 %v437_v1, 0.0  ;;  %v1190_v5 = vrot.slane %v1188_v3, 4 }
  0xb9   : > { %v1366_v18 = vpack.c.bf16 %v3623_v8, %v3623_v8  ;;  %v533_v19 = vrot.slane %v3623_v8, 7  ;;  %v905_v23 = vmul.f32 %v3606_v52, %v3623_v8  ;;  %v1154_v30 = vmul.f32 %v3629_v9, %v3623_v8 }
  0xba   : > { %v1528_v31 = vmul.f32 %v3582_v14, %v3623_v8  ;;  %v621_v34 = vpack.c.bf16 %v3623_v8, %v481_v53  ;;  %v594_v53 = vmul.f32 %v3373_v6, %v532_v29 }
  0xbb   : > { %v1403_v38 = vunpack.c.l.b16 %v1366_v18  ;;  %v534_v39 = vsel %vm527_vm1, %v531_v7, %v533_v19  ;;  %v3649_v41 = vpack.c.bf16 %v905_v23, %v904_v20 }
  0xbc   : > { %v439_v44 = vpop.f32.mrf.mxu0  ;;  %v595_v40 = vmul.f32 %v3398_v15, %v534_v39  ;;  %v3652_v47 = vpack.c.bf16 %v1528_v31, %v1527_v58  ;;  %v3665_v15 = vsel %vm1103_vm4, %v1107_v60, %v1109_v10  ;;  %v1185_v58 = vshrl.u32 %v1169_v0, 16  ;;  %v3676_v60 = vpop.permute.xlu1 %871 }
  0xbd   : > { %v440_v49 = vadd.f32 %v3542_v59, %v439_v44  ;;  %2886 = vmatmul.msk.bf16.gmra.mxu1 %vm645_vm3, %v621_v34  ;;  %v3658_v14 = vpack.c.b16 %v1403_v38, %v1402_v25  ;;  %v942_v50 = vshll.u32 %v3649_v41, 16  ;;  %v3683_v25 = vsel %vm1103_vm4, %v1109_v10, %v1111_v63  ;;  %v3686_v39 = vpop.permute.xlu2 %879  ;;  %v3690_v44 = vpop.permute.xlu0 %881 }
  0xbe   : > { %v609_v62 = vpack.c.bf16 %v595_v40, %v594_v53  ;;  %v1187_v7 = vrot.slane %v1185_v58, 3 }
  0xbf   : > { %v483_v56 = vmax.f32 %v440_v49, 0.0  ;;  %2451 = vrot.lane.b32.xlu2 %v3658_v14, %s3284_s11  ;;  %v3669_v57 = vrot.slane %v942_v50, 1  ;;  %v1561_v50 = vshll.u32 %v3652_v47, 16 }
  0xc0   : > { %v1191_v10 = vor.u32 %v1190_v5, %v1187_v7 }
  0xc1   : > { %v945_v6 = vsel %vm933_vm5, %v940_v55, %v3669_v57  ;;  %v1155_v1 = vmul.f32 %v3665_v15, %v483_v56  ;;  %v1529_v18 = vmul.f32 %v3587_v24, %v483_v56  ;;  %v1367_v23 = vpack.c.bf16 %v483_v56, %v483_v56 }
  0xc2   : > { %2902 = vmatmul.msk.bf16.gmra.mxu2 %vm645_vm3, %v609_v62  ;;  %2921 = vmatmul.msk.bf16.vlgmr.msra.gmra.mxu3 %vm645_vm3, %v945_v6  ;;  %v535_v29 = vrot.slane %v483_v56, 7  ;;  %v1728_v31 = vmul.f32 %v3610_v54, %v483_v56  ;;  %v1727_v24 = vmul.f32 %v3591_v28, %v3623_v8  ;;  %v2033_v40 = vrot.slane %v483_v56, 1 }
  0xc3   : > { %v1170_v0 = vpack.c.bf16 %v1155_v1, %v1154_v30  ;;  %v3697_v30 = vsel %vm1103_vm4, %v1111_v63, %v4787_v4  ;;  %v906_v54 = vmul.f32 %v3580_v13, %v483_v56  ;;  %v1404_v3 = vunpack.c.l.b16 %v1367_v23 }
  0xc4   : > { %v441_v11 = vpop.f32.mrf.mxu0  ;;  %v536_v62 = vsel %vm527_vm1, %v533_v19, %v535_v29  ;;  %v1744_v6 = vpack.c.bf16 %v1728_v31, %v1727_v24  ;;  %v946_v23 = vshrl.u32 %v3649_v41, 16  ;;  %v1559_v31 = vshrl.u32 %v3652_v47, 16 }
  0xc5   : > { %v442_v20 = vadd.f32 %v3542_v59, %v441_v11  ;;  %v1193_v34 = vshrl.u32 %v1170_v0, 16  ;;  %v1196_v38 = vshll.u32 %v1170_v0, 16  ;;  %v3717_v0 = vpop.permute.xlu1 %877  ;;  %v596_v24 = vmul.f32 %v3417_v21, %v536_v62 }
  0xc6   : > { %v1563_v47 = vrot.slane %v1561_v50, 1  ;;  %v948_v21 = vor.u32 %v946_v23, %v3669_v57  ;;  %v2082_v50 = vpop.permute.xlu2 %2081 }
  0xc7   : > { %v3688_v43 = vmax.f32 %v442_v20, 0.0  ;;  %v1195_v49 = vrot.slane %v1193_v34, 3  ;;  %v1198_v28 = vrot.slane %v1196_v38, 4 }
  0xc9   : > { %v2034_v53 = vrot.slane %v3688_v43, 1  ;;  %v1368_v55 = vpack.c.bf16 %v3688_v43, %v3688_v43  ;;  %v4786_v58 = vrot.slane %v3688_v43, 7  ;;  %v907_v63 = vmul.f32 %v3593_v32, %v3688_v43 }
  0xca   : > { %v3712_v7 = vpack.c.bf16 %v3688_v43, %v483_v56  ;;  %v3729_v38 = vor.u32 %v1198_v28, %v1195_v49  ;;  %v1530_v41 = vmul.f32 %v3606_v52, %v3688_v43  ;;  %v1115_v52 = vrot.slane %v3408_v17, 1 }
  0xcb   : > { %v2035_v1 = vsel %vm1103_vm4, %v2033_v40, %v2034_v53  ;;  %v1405_v5 = vunpack.c.l.b16 %v1368_v55  ;;  %v538_v11 = vsel %vm527_vm1, %v535_v29, %v4786_v58  ;;  %v3720_v19 = vpack.c.bf16 %v907_v63, %v906_v54 }
  0xcc   : > { %4808 = vst [vmem:[#allocation2_spill] sm:$0xff] %v3712_v7  ;;  %v444_v20 = vpop.f32.mrf.mxu0  ;;  %v597_v8 = vmul.f32 %v3403_v16, %v538_v11  ;;  %v1156_v29 = vmul.f32 %v3683_v25, %v3688_v43  ;;  %v1759_v55 = vshrl.u32 %v1744_v6, 16  ;;  %v3743_v49 = vsel %vm1183_vm6, %v1191_v10, %v3729_v38 }
  0xcd   : > { %v445_v34 = vadd.f32 %v3542_v59, %v444_v20  ;;  %2887 = vmatmul.msk.bf16.gmra.mxu1 %vm645_vm3, %v3712_v7  ;;  %v3727_v56 = vpack.c.b16 %v1405_v5, %v1404_v3  ;;  %v950_v40 = vshll.u32 %v3720_v19, 16  ;;  %v1762_v3 = vshll.u32 %v1744_v6, 16  ;;  %v2084_v5 = vpop.permute.xlu0 %2083 }
  0xce   : > { %v610_v28 = vpack.c.bf16 %v597_v8, %v596_v24  ;;  %v3748_v63 = vpack.c.bf16 %v1530_v41, %v1529_v18  ;;  %v1729_v6 = vmul.f32 %v3629_v9, %v3688_v43  ;;  %v1564_v20 = vor.u32 %v1563_v47, %v1559_v31 }
  0xcf   : > { %v3737_v54 = vmax.f32 %v445_v34, 0.0  ;;  %2453 = vrot.lane.b32.xlu1 %v3727_v56, %s3284_s11  ;;  %v3746_v62 = vrot.slane %v950_v40, 1  ;;  %v1761_v9 = vrot.slane %v1759_v55, 3  ;;  %v1764_v24 = vrot.slane %v1762_v3, 4 }
  0xd0   : > { %v1566_v8 = vshll.u32 %v3748_v63, 16  ;;  %v3764_v40 = vmul.f32 %v2082_v50, %v2035_v1 }
  0xd1   : > { %v2036_v11 = vrot.slane %v3737_v54, 1  ;;  %v1730_v10 = vmul.f32 %v3665_v15, %v3737_v54  ;;  %v953_v57 = vsel %vm933_vm5, %v948_v21, %v3746_v62  ;;  %v1157_v18 = vmul.f32 %v3697_v30, %v3737_v54 }
  0xd2   : > { %2903 = vmatmul.msk.bf16.gmra.mxu2 %vm645_vm3, %v610_v28  ;;  %2922 = vmatmul.msk.bf16.gmra.mxu3 %vm645_vm3, %v953_v57  ;;  %4809 = vst [vmem:[#allocation3_spill] sm:$0xff] %v3764_v40  ;;  %v3768_v21 = vrot.slane %v1566_v8, 1  ;;  %v539_v4 = vrot.slane %v3737_v54, 7  ;;  %v3772_v57 = vpop.permute.xlu1 %883  ;;  %v1765_v8 = vor.u32 %v1764_v24, %v1761_v9 }
  0xd3   : > { %v2037_v23 = vsel %vm1103_vm4, %v2034_v53, %v2036_v11  ;;  %v1745_v34 = vpack.c.bf16 %v1730_v10, %v1729_v6  ;;  %v1171_v28 = vpack.c.bf16 %v1157_v18, %v1156_v29  ;;  %v4811_v6 = vrot.slane %v3403_v16, 1 }
  0xd4   : > { %v3766_v15 = vmul.f32 %v2084_v5, %v2037_v23  ;;  %v446_v41 = vpop.f32.mrf.mxu0  ;;  %v3778_v3 = vsel %vm933_vm5, %v1564_v20, %v3768_v21  ;;  %v1117_v18 = vrot.slane %v3422_v22, 1 }
  0xd5   : > { %v447_v58 = vadd.f32 %v3542_v59, %v446_v41  ;;  %v1767_v31 = vshrl.u32 %v1745_v34, 16  ;;  %v1770_v47 = vshll.u32 %v1745_v34, 16  ;;  %v1202_v55 = vshrl.u32 %v1171_v28, 16 }
  0xd6   : > { %4810 = vst [vmem:[#allocation4_spill] sm:$0xff] %v3766_v15  ;;  %v1205_v1 = vshll.u32 %v1171_v28, 16  ;;  %v3787_v10 = vsel %vm1103_vm4, %v4811_v6, %v1115_v52  ;;  %v908_v28 = vmul.f32 %v3595_v33, %v3737_v54 }
  0xd7   : > { %v3780_v29 = vmax.f32 %v447_v58, 0.0  ;;  %v1769_v50 = vrot.slane %v1767_v31, 3  ;;  %v1772_v5 = vrot.slane %v1770_v47, 4  ;;  %v1204_v23 = vrot.slane %v1202_v55, 3 }
  0xd8   : > { %v1207_v34 = vrot.slane %v1205_v1, 4  ;;  %v4812_v31 = vrot.slane %v3688_v43, 7 }
  0xd9   : > { %v2038_v41 = vrot.slane %v3780_v29, 1  ;;  %v3791_v20 = vor.u32 %v1772_v5, %v1769_v50  ;;  %v4788_v58 = vrot.slane %v3780_v29, 7  ;;  %v909_v47 = vmul.f32 %v3632_v12, %v3780_v29 }
  0xda   : > { %v540_v16 = vsel %vm527_vm1, %v4812_v31, %v539_v4  ;;  %v3801_v6 = vor.u32 %v1207_v34, %v1204_v23  ;;  %v1158_v9 = vmul.f32 %v3787_v10, %v3780_v29  ;;  %v3810_v1 = vpack.c.bf16 %v3780_v29, %v3737_v54 }
  0xdb   : > { %v2039_v24 = vsel %vm1103_vm4, %v2036_v11, %v2038_v41  ;;  %v1774_v55 = vsel %vm1183_vm6, %v1765_v8, %v3791_v20  ;;  %v542_v43 = vsel %vm527_vm1, %v539_v4, %v4788_v58  ;;  %v3817_v23 = vpack.c.bf16 %v909_v47, %v908_v28 }
  0xdc   : > { %4813 = vst [vmem:[#allocation5_spill] sm:$0xff] %v3810_v1  ;;  %v449_v50 = vpop.f32.mrf.mxu0  ;;  %3001 = vmatmul.msk.bf16.vlgmr.msrb.gmra.mxu0 %vm645_vm3, %v1774_v55  ;;  %v599_v5 = vmul.f32 %v3422_v22, %v542_v43  ;;  %v3822_v11 = vsel %vm1183_vm6, %v3729_v38, %v3801_v6  ;;  %v1369_v8 = vpack.c.bf16 %v3737_v54, %v3737_v54  ;;  %v954_v47 = vshrl.u32 %v3720_v19, 16 }
  0xdd   : > { %v450_v34 = vadd.f32 %v3542_v59, %v449_v50  ;;  %2888 = vmatmul.msk.bf16.gmra.mxu1 %vm645_vm3, %v3810_v1  ;;  %v1370_v4 = vpack.c.bf16 %v3780_v29, %v3780_v29  ;;  %v1531_v28 = vmul.f32 %v3580_v13, %v3737_v54  ;;  %v1532_v31 = vmul.f32 %v3593_v32, %v3780_v29  ;;  %v2086_v54 = vpop.permute.xlu1 %2085  ;;  %v2088_v1 = vpop.permute.xlu2 %2087 }
  0xde   : > { %v598_v38 = vmul.f32 %v3408_v17, %v540_v16  ;;  %v958_v55 = vshll.u32 %v3817_v23, 16  ;;  %v3845_v50 = vsel %vm1103_vm4, %v1115_v52, %v1117_v18  ;;  %v956_v16 = vor.u32 %v954_v47, %v3746_v62 }
  0xdf   : > { %v3838_v43 = vmax.f32 %v450_v34, 0.0  ;;  %v1407_v53 = vunpack.c.l.b16 %v1370_v4  ;;  %v3847_v13 = vpack.c.bf16 %v1532_v31, %v1531_v28  ;;  %v1406_v19 = vunpack.c.l.b16 %v1369_v8  ;;  %v3125_v31 = vld [vmem:[%s4782_s3 + $0x50] sm:$0xff] }
  0xe0   : > { %v611_v32 = vpack.c.bf16 %v599_v5, %v598_v38  ;;  %v3850_v58 = vrot.slane %v958_v55, 1  ;;  %v1731_v40 = vmul.f32 %v3683_v25, %v3780_v29  ;;  %v1570_v8 = vshrl.u32 %v3748_v63, 16  ;;  %1669 = vmatpush.bf16.msrb.mxu3 %v3125_v31 }
  0xe1   : > { %v2040_v34 = vrot.slane %v3838_v43, 1  ;;  %v1732_v17 = vmul.f32 %v3697_v30, %v3838_v43  ;;  %v1159_v62 = vmul.f32 %v3845_v50, %v3838_v43  ;;  %v3862_v5 = vpack.c.b16 %v1407_v53, %v1406_v19 }
  0xe2   : > { %2904 = vmatmul.msk.bf16.gmra.mxu2 %vm645_vm3, %v611_v32  ;;  %v961_v52 = vsel %vm933_vm5, %v956_v16, %v3850_v58  ;;  %v1119_v4 = vrot.slane %v3430_v26, 1  ;;  %v3866_v28 = vmul.f32 %v2086_v54, %v2039_v24  ;;  %v1572_v55 = vor.u32 %v1570_v8, %v3768_v21 }
  0xe3   : > { %2923 = vmatmul.msk.bf16.gmra.mxu3 %vm645_vm3, %v961_v52  ;;  %v2041_v25 = vsel %vm1103_vm4, %v2038_v41, %v2040_v34  ;;  %v1746_v30 = vpack.c.bf16 %v1732_v17, %v1731_v40  ;;  %v1172_v53 = vpack.c.bf16 %v1159_v62, %v1158_v9  ;;  %v1574_v63 = vshll.u32 %v3847_v13, 16 }
  0xe4   : > { %4814 = vst [vmem:[#allocation6_spill] sm:$0xff] %v3866_v28  ;;  %v3873_v38 = vmul.f32 %v2088_v1, %v2041_v25  ;;  %v451_v47 = vpop.f32.mrf.mxu0  ;;  %v543_v16 = vrot.slane %v3838_v43, 7  ;;  %v3886_v21 = vsel %vm1103_vm4, %v1117_v18, %v1119_v4  ;;  %v4793_v62 = vrot.slane %v3435_v27, 1 }
  0xe5   : > { %v452_v24 = vadd.f32 %v3542_v59, %v451_v47  ;;  %v1776_v54 = vshrl.u32 %v1746_v30, 16  ;;  %v1779_v32 = vshll.u32 %v1746_v30, 16  ;;  %v1211_v41 = vshrl.u32 %v1172_v53, 16 }
  0xe6   : > { %4815 = vst [vmem:[#allocation7_spill] sm:$0xff] %v3873_v38  ;;  %v1214_v19 = vshll.u32 %v1172_v53, 16  ;;  %v1576_v1 = vrot.slane %v1574_v63, 1  ;;  %v910_v63 = vmul.f32 %v3615_v61, %v3838_v43  ;;  %v4816_v22 = vrot.slane %v3780_v29, 7 }
  0xe7   : > { %v3881_v17 = vmax.f32 %v452_v24, 0.0  ;;  %v1778_v9 = vrot.slane %v1776_v54, 3  ;;  %v1781_v52 = vrot.slane %v1779_v32, 4  ;;  %v1213_v8 = vrot.slane %v1211_v41, 3 }
  0xe8   : > { %v1216_v25 = vrot.slane %v1214_v19, 4  ;;  %v3890_v30 = vsel %vm933_vm5, %v1572_v55, %v1576_v1  ;;  %v544_v18 = vsel %vm527_vm1, %v4816_v22, %v543_v16 }
  0xe9   : > { %v2042_v31 = vrot.slane %v3881_v17, 1  ;;  %v3893_v47 = vor.u32 %v1781_v52, %v1778_v9  ;;  %v4791_v53 = vrot.slane %v3881_v17, 7  ;;  %v911_v24 = vmul.f32 %v3617_v2, %v3881_v17 }
  0xea   : > { %v3903_v54 = vor.u32 %v1216_v25, %v1213_v8  ;;  %v1160_v55 = vmul.f32 %v3886_v21, %v3881_v17  ;;  %v3913_v19 = vpack.c.bf16 %v3881_v17, %v3838_v43  ;;  %v1534_v22 = vmul.f32 %v3632_v12, %v3881_v17 }
  0xeb   : > { %v2043_v32 = vsel %vm1103_vm4, %v2040_v34, %v2042_v31  ;;  %v1783_v41 = vsel %vm1183_vm6, %v3791_v20, %v3893_v47  ;;  %v546_v29 = vsel %vm527_vm1, %v543_v16, %v4791_v53  ;;  %v3920_v8 = vpack.c.bf16 %v911_v24, %v910_v63 }
  0xec   : > { %4817 = vst [vmem:[#allocation8_spill] sm:$0xff] %v3913_v19  ;;  %v454_v9 = vpop.f32.mrf.mxu0  ;;  %3002 = vmatmul.msk.bf16.gmra.mxu0 %vm645_vm3, %v1783_v41  ;;  %v601_v52 = vmul.f32 %v3435_v27, %v546_v29  ;;  %v3925_v34 = vsel %vm1183_vm6, %v3801_v6, %v3903_v54  ;;  %v1371_v20 = vpack.c.bf16 %v3838_v43, %v3838_v43  ;;  %v962_v24 = vshrl.u32 %v3817_v23, 16  ;;  %v2092_v23 = vpop.permute.xlu1 %2091 }
  0xed   : > { %v455_v25 = vadd.f32 %v3542_v59, %v454_v9  ;;  %2889 = vmatmul.msk.bf16.gmra.mxu1 %vm645_vm3, %v3913_v19  ;;  %v1372_v16 = vpack.c.bf16 %v3881_v17, %v3881_v17  ;;  %v1533_v63 = vmul.f32 %v3595_v33, %v3838_v43  ;;  %v600_v6 = vmul.f32 %v3430_v26, %v544_v18  ;;  %v2090_v33 = vpop.permute.xlu0 %2089 }
  0xee   : > { %v966_v41 = vshll.u32 %v3920_v8, 16  ;;  %v3946_v9 = vsel %vm1103_vm4, %v1119_v4, %v4793_v62  ;;  %v964_v12 = vor.u32 %v962_v24, %v3850_v58  ;;  %v1408_v26 = vunpack.c.l.b16 %v1371_v20 }
  0xef   : > { %v3941_v29 = vmax.f32 %v455_v25, 0.0  ;;  %v1409_v40 = vunpack.c.l.b16 %v1372_v16  ;;  %v3948_v53 = vpack.c.bf16 %v1534_v22, %v1533_v63  ;;  %v612_v43 = vpack.c.bf16 %v601_v52, %v600_v6 }
  0xf0   : > { %v3951_v19 = vrot.slane %v966_v41, 1  ;;  %v1733_v25 = vmul.f32 %v3787_v10, %v3881_v17  ;;  %v1578_v20 = vshrl.u32 %v3847_v13, 16  ;;  %v1123_v63 = vrot.slane %v3452_v35, 1 }
  0xf1   : > { %v2044_v18 = vrot.slane %v3941_v29, 1  ;;  %v1734_v4 = vmul.f32 %v3845_v50, %v3941_v29  ;;  %v1161_v58 = vmul.f32 %v3946_v9, %v3941_v29  ;;  %v3963_v52 = vpack.c.b16 %v1409_v40, %v1408_v26 }
  0xf2   : > { %2905 = vmatmul.msk.bf16.gmra.mxu2 %vm645_vm3, %v612_v43  ;;  %v969_v16 = vsel %vm933_vm5, %v964_v12, %v3951_v19  ;;  %v3967_v22 = vmul.f32 %v2090_v33, %v2043_v32  ;;  %v1580_v43 = vor.u32 %v1578_v20, %v1576_v1  ;;  %v1582_v12 = vshll.u32 %v3948_v53, 16 }
  0xf3   : > { %2924 = vmatmul.msk.bf16.gmra.mxu3 %vm645_vm3, %v969_v16  ;;  %v2045_v10 = vsel %vm1103_vm4, %v2042_v31, %v2044_v18  ;;  %v1747_v50 = vpack.c.bf16 %v1734_v4, %v1733_v25  ;;  %v1173_v41 = vpack.c.bf16 %v1161_v58, %v1160_v55  ;;  %v547_v62 = vrot.slane %v3941_v29, 7 }
  0xf4   : > { %4818 = vst [vmem:[#allocation9_spill] sm:$0xff] %v3967_v22  ;;  %v3971_v6 = vmul.f32 %v2092_v23, %v2045_v10  ;;  %v456_v24 = vpop.f32.mrf.mxu0  ;;  %v3978_v31 = vrot.slane %v1582_v12, 1  ;;  %v1125_v23 = vrot.slane %v3457_v36, 1  ;;  %v1127_v4 = vrot.slane %v3462_v37, 1 }
  0xf5   : > { %v457_v40 = vadd.f32 %v3542_v59, %v456_v24  ;;  %v1785_v26 = vshrl.u32 %v1747_v50, 16  ;;  %v1788_v13 = vshll.u32 %v1747_v50, 16  ;;  %v1220_v33 = vshrl.u32 %v1173_v41, 16 }
  0xf6   : > { %4819 = vst [vmem:[#allocation10_spill] sm:$0xff] %v3971_v6  ;;  %v1223_v16 = vshll.u32 %v1173_v41, 16  ;;  %v3987_v10 = vsel %vm933_vm5, %v1580_v43, %v3978_v31  ;;  %v912_v37 = vmul.f32 %v3676_v60, %v3941_v29  ;;  %v4821_v43 = vrot.slane %v3435_v27, 1 }
  0xf7   : > { %v3981_v25 = vmax.f32 %v457_v40, 0.0  ;;  %v1787_v1 = vrot.slane %v1785_v26, 3  ;;  %v1790_v55 = vrot.slane %v1788_v13, 4  ;;  %v1222_v20 = vrot.slane %v1220_v33, 3 }
  0xf8   : > { %v1225_v12 = vrot.slane %v1223_v16, 4  ;;  %v4820_v40 = vrot.slane %v3881_v17, 7  ;;  %v4003_v33 = vsel %vm1103_vm4, %v4821_v43, %v1123_v63 }
  0xf9   : > { %v2046_v50 = vrot.slane %v3981_v25, 1  ;;  %v3990_v24 = vor.u32 %v1790_v55, %v1787_v1  ;;  %v4794_v41 = vrot.slane %v3981_v25, 7  ;;  %v913_v13 = vmul.f32 %v3654_v48, %v3981_v25 }
  0xfa   : > { %v548_v26 = vsel %vm527_vm1, %v4820_v40, %v547_v62  ;;  %v4011_v17 = vpack.c.bf16 %v3981_v25, %v3941_v29  ;;  %v4019_v40 = vrot.slane %v3485_v46, 1  ;;  %v1162_v46 = vmul.f32 %v4003_v33, %v3981_v25 }
  0xfb   : > { %v2047_v1 = vsel %vm1103_vm4, %v2044_v18, %v2046_v50  ;;  %v1792_v16 = vsel %vm1183_vm6, %v3893_v47, %v3990_v24  ;;  %v550_v55 = vsel %vm527_vm1, %v547_v62, %v4794_v41  ;;  %v4023_v43 = vpack.c.bf16 %v913_v13, %v912_v37 }
  0xfc   : > { %4822 = vst [vmem:[#allocation11_spill] sm:$0xff] %v4011_v17  ;;  %v459_v18 = vpop.f32.mrf.mxu0  ;;  %3003 = vmatmul.msk.bf16.gmra.mxu0 %vm645_vm3, %v1792_v16  ;;  %v603_v47 = vmul.f32 %v3457_v36, %v550_v55  ;;  %v970_v62 = vshrl.u32 %v3920_v8, 16  ;;  %v4029_v41 = vor.u32 %v1225_v12, %v1222_v20  ;;  %v602_v27 = vmul.f32 %v3452_v35, %v548_v26 }
  0xfd   : > { %v460_v32 = vadd.f32 %v3542_v59, %v459_v18  ;;  %2890 = vmatmul.msk.bf16.gmra.mxu1 %vm645_vm3, %v4011_v17  ;;  %v974_v16 = vshll.u32 %v4023_v43, 16  ;;  %v1373_v36 = vpack.c.bf16 %v3941_v29, %v3941_v29  ;;  %v1374_v37 = vpack.c.bf16 %v3981_v25, %v3981_v25  ;;  %v2096_v18 = vpop.permute.xlu0 %2095 }
  0xfe   : > { %v4046_v8 = vsel %vm1103_vm4, %v1123_v63, %v1125_v23  ;;  %v4049_v20 = vsel %vm1103_vm4, %v1125_v23, %v1127_v4  ;;  %v4054_v35 = vsel %vm1183_vm6, %v3903_v54, %v4029_v41  ;;  %v613_v12 = vpack.c.bf16 %v603_v47, %v602_v27  ;;  %v474_v27 = vpop.f32.mrf.mxu1 }
  0xff   : > { %v4039_v13 = vmax.f32 %v460_v32, 0.0  ;;  %v972_v26 = vor.u32 %v970_v62, %v3951_v19  ;;  %v4057_v55 = vrot.slane %v974_v16, 1  ;;  %v1411_v32 = vunpack.c.l.b16 %v1374_v37  ;;  %v2094_v16 = vpop.permute.xlu2 %2093 }
 0x100   : > { %v1735_v63 = vmul.f32 %v3886_v21, %v3981_v25  ;;  %v4823_v17 = vrot.slane %v3472_v42, 1  ;;  %v1410_v62 = vunpack.c.l.b16 %v1373_v36  ;;  %v1536_v21 = vmul.f32 %v3617_v2, %v3981_v25 }
 0x101   : > { %v2048_v58 = vrot.slane %v4039_v13, 1  ;;  %v1736_v23 = vmul.f32 %v3946_v9, %v4039_v13  ;;  %v977_v19 = vsel %vm933_vm5, %v972_v26, %v4057_v55  ;;  %v1163_v47 = vmul.f32 %v4046_v8, %v4039_v13 }
 0x102   : > { %v4067_v54 = vsel %vm1103_vm4, %v1127_v4, %v4823_v17  ;;  %2906 = vmatmul.msk.bf16.gmra.mxu2 %vm645_vm3, %v613_v12  ;;  %v475_v17 = vadd.f32 %v3542_v59, %v474_v27  ;;  %v1535_v37 = vmul.f32 %v3615_v61, %v3941_v29  ;;  %v4082_v12 = vmul.f32 %v2094_v16, %v2047_v1 }
 0x103   : > { %2925 = vmatmul.msk.bf16.gmra.mxu3 %vm645_vm3, %v977_v19  ;;  %v2049_v9 = vsel %vm1103_vm4, %v2046_v50, %v2048_v58  ;;  %v1748_v4 = vpack.c.bf16 %v1736_v23, %v1735_v63  ;;  %v1174_v22 = vpack.c.bf16 %v1163_v47, %v1162_v46  ;;  %v4086_v6 = vpack.c.b16 %v1411_v32, %v1410_v62  ;;  %v3122_v32 = vld [vmem:[%s4782_s3 + $0x38] sm:$0xff] }
 0x104   : > { %4824 = vst [vmem:[#allocation12_spill] sm:$0xff] %v4082_v12  ;;  %v4084_v26 = vmul.f32 %v2096_v18, %v2049_v9  ;;  %v461_v36 = vpop.f32.mrf.mxu0  ;;  %v551_v50 = vrot.slane %v4039_v13, 7  ;;  %v4092_v61 = vpack.c.bf16 %v1536_v21, %v1535_v37  ;;  %v4096_v46 = vstv %s504_s15  ;;  %1306 = vmatpush.bf16.msra.mxu1 %v3122_v32 }
 0x105   : > { %v462_v2 = vadd.f32 %v3542_v59, %v461_v36  ;;  %v1794_v19 = vshrl.u32 %v1748_v4, 16  ;;  %v1797_v28 = vshll.u32 %v1748_v4, 16  ;;  %v1229_v23 = vshrl.u32 %v1174_v22, 16 }
 0x106   : > { %4825 = vst [vmem:[#allocation13_spill] sm:$0xff] %v4084_v26  ;;  %v1232_v27 = vshll.u32 %v1174_v22, 16  ;;  %v497_v47 = vmax.f32 %v475_v17, 0.0  ;;  %v1586_v9 = vshrl.u32 %v3948_v53, 16  ;;  %v4826_v37 = vrot.slane %v3981_v25, 7  ;;  %v3121_v53 = vld [vmem:[%s4782_s3 + $0x30] sm:$0xff] }
 0x107   : > { %v4094_v29 = vmax.f32 %v462_v2, 0.0  ;;  %v1796_v1 = vrot.slane %v1794_v19, 3  ;;  %v1799_v18 = vrot.slane %v1797_v28, 4  ;;  %v1231_v62 = vrot.slane %v1229_v23, 3  ;;  %v3124_v19 = vld [vmem:[%s4782_s3 + $0x48] sm:$0xff] }
 0x108   : > { %v1234_v16 = vrot.slane %v1232_v27, 4  ;;  %v1590_v28 = vshll.u32 %v4092_v61, 16  ;;  %v552_v36 = vsel %vm527_vm1, %v4826_v37, %v551_v50  ;;  %v914_v17 = vmul.f32 %v3661_v51, %v4039_v13  ;;  %v476_v37 = vpop.f32.mrf.mxu1  ;;  %1468 = vmatpush.bf16.msrb.mxu2 %v3124_v19  ;;  %1307 = vmatpush.bf16.msra.mxu1 %v3121_v53 }
 0x109   : > { %v4799_v4 = vrot.slane %v4094_v29, 1  ;;  %v4103_v22 = vor.u32 %v1799_v18, %v1796_v1  ;;  %v4800_v21 = vrot.slane %v4094_v29, 7  ;;  %v915_v2 = vmul.f32 %v3717_v0, %v4094_v29 }
 0x10a   : > { %v4120_v23 = vor.u32 %v1234_v16, %v1231_v62  ;;  %v4132_v1 = vpack.c.bf16 %v4094_v29, %v4039_v13  ;;  %v4159_v19 = vmul.f32 %v4096_v46, %v497_v47  ;;  %v1375_v47 = vpack.c.bf16 %v4039_v13, %v4039_v13 }
 0x10b   : > { %v4125_v25 = vsel %vm1103_vm4, %v2048_v58, %v4799_v4  ;;  %v1801_v27 = vsel %vm1183_vm6, %v3990_v24, %v4103_v22  ;;  %v554_v18 = vsel %vm527_vm1, %v551_v50, %v4800_v21  ;;  %v4139_v16 = vpack.c.bf16 %v915_v2, %v914_v17 }
 0x10c   : > { %4827 = vst [vmem:[#allocation14_spill] sm:$0xff] %v4132_v1  ;;  %v464_v32 = vpop.f32.mrf.mxu0  ;;  %3004 = vmatmul.msk.bf16.gmra.mxu0 %vm645_vm3, %v1801_v27  ;;  %v605_v62 = vmul.f32 %v3472_v42, %v554_v18  ;;  %v978_v58 = vshrl.u32 %v4023_v43, 16  ;;  %v1588_v24 = vor.u32 %v1586_v9, %v3978_v31  ;;  %v4149_v50 = vsel %vm1183_vm6, %v4029_v41, %v4120_v23  ;;  %v3238_v43 = vld [vmem:[%s4780_s1 + $0x60] sm:$0xff] }
 0x10d   : > { %v465_v63 = vadd.f32 %v3542_v59, %v464_v32  ;;  %2891 = vmatmul.msk.bf16.gmra.mxu1 %vm645_vm3, %v4132_v1  ;;  %v1592_v27 = vrot.slane %v1590_v28, 1  ;;  %v1164_v17 = vmul.f32 %v4049_v20, %v4094_v29  ;;  %v604_v31 = vmul.f32 %v3238_v43, %v552_v36  ;;  %v3123_v41 = vld [vmem:[%s4782_s3 + $0x40] sm:$0xff] }
 0x10e   : > { %v980_v9 = vor.u32 %v978_v58, %v4057_v55  ;;  %v982_v2 = vshll.u32 %v4139_v16, 16  ;;  %v4167_v18 = vadd.f32 %v3542_v59, %v476_v37  ;;  %v1376_v55 = vpack.c.bf16 %v4094_v29, %v4094_v29  ;;  %1469 = vmatpush.bf16.msrb.mxu2 %v3123_v41 }
 0x10f   : > { %v4164_v28 = vmax.f32 %v465_v63, 0.0  ;;  %v4170_v32 = vsel %vm933_vm5, %v1588_v24, %v1592_v27  ;;  %v614_v36 = vpack.c.bf16 %v605_v62, %v604_v31  ;;  %v1538_v53 = vmul.f32 %v3654_v48, %v4094_v29 }
 0x110   : > { %v984_v58 = vrot.slane %v982_v2, 1  ;;  %v4828_v63 = vrot.slane %v3480_v45, 1  ;;  %v1737_v24 = vmul.f32 %v4003_v33, %v4094_v29  ;;  %v4830_v2 = vrot.slane %v3472_v42, 1 }
 0x111   : > { %v1738_v43 = vmul.f32 %v4046_v8, %v4164_v28  ;;  %v1537_v33 = vmul.f32 %v3676_v60, %v4039_v13  ;;  %v555_v45 = vrot.slane %v4164_v28, 7  ;;  %v986_v42 = vshrl.u32 %v4139_v16, 16 }
 0x112   : > { %v4182_v37 = vsel %vm1103_vm4, %v4828_v63, %v4019_v40  ;;  %2907 = vmatmul.msk.bf16.gmra.mxu2 %vm645_vm3, %v614_v36  ;;  %v985_v62 = vsel %vm933_vm5, %v980_v9, %v984_v58  ;;  %v4829_v31 = vmov %v4828_v63  ;;  %v1165_v9 = vmul.f32 %v4067_v54, %v4164_v28 }
 0x113   : > { %v4192_v48 = vmul.f32 %v4182_v37, %v4159_v19  ;;  %v4199_v63 = vsel %vm1103_vm4, %v4830_v2, %v4829_v31  ;;  %2926 = vmatmul.msk.bf16.gmra.mxu3 %vm645_vm3, %v985_v62  ;;  %v1749_v8 = vpack.c.bf16 %v1738_v43, %v1737_v24  ;;  %v1413_v36 = vunpack.c.l.b16 %v1376_v55 }
 0x114   : > { %v466_v4 = vpop.f32.mrf.mxu0  ;;  %v1412_v21 = vunpack.c.l.b16 %v1375_v47  ;;  %v4209_v31 = vpack.c.bf16 %v1538_v53, %v1537_v33  ;;  %v1175_v62 = vpack.c.bf16 %v1165_v9, %v1164_v17  ;;  %v2052_v24 = vrot.slane %v4164_v28, 1 }
 0x115   : > { %v467_v2 = vadd.f32 %v3542_v59, %v466_v4  ;;  %v1803_v60 = vshrl.u32 %v1749_v8, 16  ;;  %v1806_v13 = vshll.u32 %v1749_v8, 16  ;;  %v1594_v41 = vshrl.u32 %v4092_v61, 16 }
 0x116   : > { %v4213_v43 = vpack.c.b16 %v1413_v36, %v1412_v21  ;;  %v1598_v55 = vshll.u32 %v4209_v31, 16  ;;  %v1238_v47 = vshrl.u32 %v1175_v62, 16  ;;  %v4831_v53 = vrot.slane %v4094_v29, 7  ;;  %v4224_v21 = vpop.permute.xlu1 %2097 }
 0x117   : > { %v4217_v1 = vmax.f32 %v467_v2, 0.0  ;;  %v1805_v12 = vrot.slane %v1803_v60, 3  ;;  %v1808_v16 = vrot.slane %v1806_v13, 4  ;;  %v916_v4 = vmul.f32 %v3686_v39, %v4164_v28 }
 0x118   : > { %v556_v59 = vsel %vm527_vm1, %v4831_v53, %v555_v45  ;;  %v1241_v17 = vshll.u32 %v1175_v62, 16  ;;  %v1600_v33 = vrot.slane %v1598_v55, 1  ;;  %v1596_v36 = vor.u32 %v1594_v41, %v1592_v27  ;;  %v3239_v41 = vld [vmem:[%s4780_s1 + $0x78] sm:$0xff] }
 0x119   : > { %v2054_v61 = vrot.slane %v4217_v1, 1  ;;  %v4227_v8 = vor.u32 %v1808_v16, %v1805_v12  ;;  %v557_v9 = vrot.slane %v4217_v1, 7  ;;  %v4232_v2 = vpack.c.bf16 %v4217_v1, %v4164_v28 }
 0x11a   : > { %v917_v60 = vmul.f32 %v3690_v44, %v4217_v1  ;;  %v1240_v13 = vrot.slane %v1238_v47, 3  ;;  %v1243_v53 = vrot.slane %v1241_v17, 4  ;;  %v4242_v16 = vsel %vm933_vm5, %v1596_v36, %v1600_v33 }
 0x11b   : > { %4832 = vst [vmem:[#allocation15_spill] sm:$0xff] %v4232_v2  ;;  %v2055_v62 = vsel %vm1103_vm4, %v2052_v24, %v2054_v61  ;;  %v1810_v55 = vsel %vm1183_vm6, %v4103_v22, %v4227_v8  ;;  %v558_v12 = vsel %vm527_vm1, %v555_v45, %v557_v9  ;;  %v1377_v22 = vpack.c.bf16 %v4164_v28, %v4164_v28  ;;  %v3240_v45 = vld [vmem:[%s4784_s5 + $0x1] ss:$0 sm:$0xff] }
 0x11c   : > { %v469_v27 = vpop.f32.mrf.mxu0  ;;  %3005 = vmatmul.msk.bf16.gmra.mxu0 %vm645_vm3, %v1810_v55  ;;  %v607_v47 = vmul.f32 %v3239_v41, %v558_v12  ;;  %v4248_v17 = vpack.c.bf16 %v917_v60, %v916_v4  ;;  %v4250_v26 = vor.u32 %v1243_v53, %v1240_v13  ;;  %v988_v36 = vor.u32 %v986_v42, %v984_v58  ;;  %v3241_v60 = vld [vmem:[%s4780_s1 + $0x70] sm:$0xff] }
 0x11d   : > { %v470_v9 = vadd.f32 %v3240_v45, %v469_v27  ;;  %2892 = vmatmul.msk.bf16.gmra.mxu1 %vm645_vm3, %v4232_v2  ;;  %v1166_v55 = vmul.f32 %v4199_v63, %v4217_v1  ;;  %v1378_v4 = vpack.c.bf16 %v4217_v1, %v4217_v1  ;;  %v606_v13 = vmul.f32 %v3241_v60, %v556_v59  ;;  %v2102_v59 = vpop.permute.xlu0 %2101 }
 0x11e   : > { %v990_v53 = vshll.u32 %v4248_v17, 16  ;;  %v4270_v12 = vsel %vm1183_vm6, %v4120_v23, %v4250_v26  ;;  %v1539_v58 = vmul.f32 %v3661_v51, %v4164_v28  ;;  %v1739_v27 = vmul.f32 %v4049_v20, %v4217_v1  ;;  %v4287_v51 = vpop.permute.xlu2 %2099  ;;  %v2104_v28 = vpop.permute.xlu1 %2103 }
 0x11f   : > { %v4274_v42 = vmax.f32 %v470_v9, 0.0  ;;  %v1415_v41 = vunpack.c.l.b16 %v1378_v4  ;;  %v1540_v2 = vmul.f32 %v3717_v0, %v4217_v1  ;;  %v615_v60 = vpack.c.bf16 %v607_v47, %v606_v13 }
 0x120   : > { %v4280_v38 = vrot.slane %v990_v53, 1  ;;  %v1414_v15 = vunpack.c.l.b16 %v1377_v22  ;;  %v4833_v23 = vrot.slane %v4094_v29, 1  ;;  %v1602_v22 = vshrl.u32 %v4209_v31, 16 }
 0x121   : > { %v2056_v9 = vrot.slane %v4274_v42, 1  ;;  %v1740_v20 = vmul.f32 %v4067_v54, %v4274_v42  ;;  %v918_v0 = vmul.f32 %v3772_v57, %v4274_v42  ;;  %v1167_v1 = vmul.f32 %v4182_v37, %v4274_v42  ;;  %v3134_v37 = vld [vmem:[%s4782_s3 + $0x98] sm:$0xff] }
 0x122   : > { %v4285_v7 = vsel %vm1103_vm4, %v4833_v23, %v2052_v24  ;;  %2908 = vmatmul.msk.bf16.gmra.mxu2 %vm645_vm3, %v615_v60  ;;  %v993_v29 = vsel %vm933_vm5, %v988_v36, %v4280_v38  ;;  %v4299_v24 = vpack.c.b16 %v1415_v41, %v1414_v15  ;;  %v4301_v47 = vpack.c.bf16 %v1540_v2, %v1539_v58 }
 0x123   : > { %v4304_v4 = vmul.f32 %v2102_v59, %v2055_v62  ;;  %2927 = vmatmul.msk.bf16.gmra.mxu3 %vm645_vm3, %v993_v29  ;;  %v2057_v54 = vsel %vm1103_vm4, %v2054_v61, %v2056_v9  ;;  %v1750_v13 = vpack.c.bf16 %v1740_v20, %v1739_v27  ;;  %v1176_v53 = vpack.c.bf16 %v1167_v1, %v1166_v55 }
 0x124   : > { %v4311_v60 = vmul.f32 %v2104_v28, %v2057_v54  ;;  %v471_v15 = vpop.f32.mrf.mxu0  ;;  %v927_v36 = vpack.c.bf16 %v918_v0, %v918_v0  ;;  %v1604_v2 = vor.u32 %v1602_v22, %v1600_v33  ;;  %v1606_v58 = vshll.u32 %v4301_v47, 16  ;;  %2336 = vmatpush.bf16.msra.mxu3 %v3134_v37 }
 0x125   : > { %v472_v31 = vadd.f32 %v3240_v45, %v471_v15  ;;  %v1812_v62 = vshrl.u32 %v1750_v13, 16  ;;  %v1815_v41 = vshll.u32 %v1750_v13, 16  ;;  %v1379_v61 = vpack.c.bf16 %v4274_v42, %v4274_v42  ;;  %v2108_v54 = vpop.permute.xlu0 %2107 }
 0x126   : > { %v2150_v27 = vpack.c.bf16 %v4311_v60, %v4304_v4  ;;  %v1247_v59 = vshrl.u32 %v1176_v53, 16  ;;  %v1250_v23 = vshll.u32 %v1176_v53, 16  ;;  %v1608_v55 = vrot.slane %v1606_v58, 1 }
 0x127   : > { %v4318_v28 = vmax.f32 %v472_v31, 0.0  ;;  %v2060_v20 = vrot.slane %v4159_v19, 1  ;;  %v1814_v33 = vrot.slane %v1812_v62, 3  ;;  %v1817_v0 = vrot.slane %v1815_v41, 4 }
 0x128   : > { %v994_v45 = vshrl.u32 %v4248_v17, 16  ;;  %v1249_v1 = vrot.slane %v1247_v59, 3  ;;  %v1252_v29 = vrot.slane %v1250_v23, 4  ;;  %v4323_v22 = vsel %vm933_vm5, %v1604_v2, %v1608_v55  ;;  %v2106_v59 = vpop.permute.xlu2 %2105 }
 0x129   : > { %v2058_v13 = vrot.slane %v4318_v28, 1  ;;  %v1818_v37 = vor.u32 %v1817_v0, %v1814_v33  ;;  %v998_v15 = vshll.u32 %v927_v36, 16  ;;  %v1741_v53 = vmul.f32 %v4199_v63, %v4318_v28 }
 0x12a   : > { %v679_v58 = vpop.f32.mrf.mxu1  ;;  %v1253_v31 = vor.u32 %v1252_v29, %v1249_v1  ;;  %v1168_v62 = vmul.f32 %v4019_v40, %v4318_v28  ;;  %v1380_v17 = vpack.c.bf16 %v4318_v28, %v4318_v28  ;;  %v1416_v41 = vunpack.c.l.b16 %v1379_v61 }
 0x12b   : > { %v2059_v2 = vsel %vm1103_vm4, %v2056_v9, %v2058_v13  ;;  %v2061_v23 = vsel %vm1103_vm4, %v2058_v13, %v2060_v20  ;;  %v1819_v36 = vsel %vm1183_vm6, %v4227_v8, %v1818_v37  ;;  %v1751_v63 = vpack.c.bf16 %v4192_v48, %v1741_v53 }
 0x12c   : > { %v4339_v33 = vmul.f32 %v2106_v59, %v2059_v2  ;;  %v4341_v0 = vmul.f32 %v2108_v54, %v2061_v23  ;;  %3006 = vmatmul.msk.bf16.gmra.mxu0 %vm645_vm3, %v1819_v36  ;;  %v4346_v61 = vsel %vm1183_vm6, %v4250_v26, %v1253_v31  ;;  %v1177_v9 = vpack.c.bf16 %v1168_v62, %v1168_v62 }
 0x12d   : > { %2941 = vmatmul.msk.bf16.vlgmr.msra.gmra.mxu1 %vm645_vm3, %v3743_v49  ;;  %v1000_v1 = vrot.slane %v998_v15, 1  ;;  %v1417_v29 = vunpack.c.l.b16 %v1380_v17  ;;  %v1541_v8 = vmul.f32 %v3686_v39, %v4274_v42  ;;  %v1542_v48 = vmul.f32 %v3690_v44, %v4318_v28 }
 0x12e   : > { %v2151_v54 = vpack.c.bf16 %v4341_v0, %v4339_v33  ;;  %v1821_v13 = vshrl.u32 %v1751_v63, 16  ;;  %v1256_v53 = vshrl.u32 %v1177_v9, 16  ;;  %v1259_v59 = vshll.u32 %v1177_v9, 16 }
 0x12f   : > { %v1824_v26 = vshll.u32 %v1751_v63, 16  ;;  %v4356_v2 = vpack.c.b16 %v1417_v29, %v1416_v41  ;;  %v4358_v62 = vpack.c.bf16 %v1542_v48, %v1541_v8  ;;  %v4834_v49 = vmax.f32 %v4167_v18, 0.0 }
 0x130   : > { %v996_v39 = vor.u32 %v994_v45, %v4280_v38  ;;  %v1258_v17 = vrot.slane %v1256_v53, 3  ;;  %v1261_v44 = vrot.slane %v1259_v59, 4  ;;  %v4368_v23 = vmul.f32 %v4224_v21, %v4125_v25 }
 0x131   : > { %v4363_v15 = vmul.f32 %v4096_v46, %v4834_v49  ;;  %v1610_v36 = vshrl.u32 %v4301_v47, 16  ;;  %v1614_v41 = vshll.u32 %v4358_v62, 16  ;;  %v4374_v63 = vmul.f32 %v4287_v51, %v4285_v7 }
 0x132   : > { %v681_v18 = vpop.f32.mrf.mxu1  ;;  %v1001_v46 = vsel %vm933_vm5, %v996_v39, %v1000_v1  ;;  %2961 = vmatmul.msk.bf16.vlgmr.msrb.gmra.mxu2 %vm645_vm3, %v3658_v14  ;;  %v1823_v38 = vrot.slane %v1821_v13, 3  ;;  %v1262_v45 = vor.u32 %v1261_v44, %v1258_v17  ;;  %v1939_v25 = vpack.c.bf16 %v4318_v28, %v4274_v42 }
 0x133   : > { %2928 = vmatmul.msk.bf16.gmra.mxu3 %vm645_vm3, %v1001_v46  ;;  %v1826_v21 = vrot.slane %v1824_v26, 4  ;;  %v1612_v47 = vor.u32 %v1610_v36, %v1608_v55  ;;  %v4382_v9 = vrot.slane %v1614_v41, 1  ;;  %v2149_v7 = vpack.c.bf16 %v4374_v63, %v4368_v23 }
 0x134   : > { %v4387_v51 = vsel %vm1183_vm6, %v1253_v31, %v1262_v45  ;;  %v1743_v48 = vmul.f32 %v4019_v40, %v4363_v15  ;;  %v2062_v42 = vrot.slane %v4363_v15, 1 }
 0x135   : > { %v764_v1 = vpop.f32.mrf.mxu2  ;;  %v4391_v29 = vsel %vm933_vm5, %v1612_v47, %v4382_v9  ;;  %v1827_v13 = vor.u32 %v1826_v21, %v1823_v38 }
 0x136   : > { %v765_v8 = vadd.f32 %v764_v1, %v679_v58  ;;  %v1752_v55 = vpack.c.bf16 %v1743_v48, %v1743_v48  ;;  %v2080_v33 = vsel %vm1103_vm4, %v2062_v42, 0.0 }
 0x137   : > { %v1828_v59 = vsel %vm1183_vm6, %v1818_v37, %v1827_v13 }
 0x138   : > { %v1830_v49 = vshrl.u32 %v1752_v55, 16  ;;  %v1833_v39 = vshll.u32 %v1752_v55, 16 }
 0x13a   : > { %v684_v53 = vpop.f32.mrf.mxu1  ;;  %v1832_v40 = vrot.slane %v1830_v49, 3  ;;  %v1835_v58 = vrot.slane %v1833_v39, 4 }
 0x13c   : > { %3007 = vmatmul.msk.bf16.gmra.mxu0 %vm645_vm3, %v1828_v59  ;;  %v1836_v46 = vor.u32 %v1835_v58, %v1832_v40 }
 0x13d   : > { %v766_v26 = vpop.f32.mrf.mxu2  ;;  %2942 = vmatmul.msk.bf16.gmra.mxu1 %vm645_vm3, %v3822_v11 }
 0x13e   : > { %v767_v31 = vadd.f32 %v766_v26, %v681_v18  ;;  %v1837_v11 = vsel %vm1183_vm6, %v1827_v13, %v1836_v46 }
 0x142   : > { %v686_v17 = vpop.f32.mrf.mxu1  ;;  %2962 = vmatmul.msk.bf16.gmra.mxu2 %vm645_vm3, %v3727_v56 }
 0x143   : > { %2981 = vmatmul.msk.bf16.vlgmr.msrb.gmra.mxu3 %vm645_vm3, %v3778_v3 }
 0x145   : > { %v769_v44 = vpop.f32.mrf.mxu2  ;;  %v1047_v37 = vpop.f32.mrf.mxu3 }
 0x146   : > { %v770_v36 = vadd.f32 %v769_v44, %v684_v53  ;;  %v4403_v41 = vadd.f32 %v1047_v37, %v765_v8 }
 0x14a   : > { %v689_v38 = vpop.f32.mrf.mxu1 }
 0x14c   : > { %3008 = vmatmul.msk.bf16.gmra.mxu0 %vm645_vm3, %v1837_v11 }
 0x14d   : > { %v771_v18 = vpop.f32.mrf.mxu2  ;;  %v1049_v45 = vpop.f32.mrf.mxu3  ;;  %2943 = vmatmul.msk.bf16.gmra.mxu1 %vm645_vm3, %v3925_v34 }
 0x14e   : > { %v772_v21 = vadd.f32 %v771_v18, %v686_v17  ;;  %v4409_v3 = vadd.f32 %v1049_v45, %v767_v31 }
 0x152   : > { %v691_v47 = vpop.f32.mrf.mxu1  ;;  %2963 = vmatmul.msk.bf16.gmra.mxu2 %vm645_vm3, %v3862_v5 }
 0x153   : > { %2982 = vmatmul.msk.bf16.gmra.mxu3 %vm645_vm3, %v3890_v30  ;;  %v3133_v30 = vld [vmem:[%s4782_s3 + $0x90] sm:$0xff] }
 0x154   : > { %2337 = vmatpush.bf16.msra.mxu3 %v3133_v30 }
 0x155   : > { %v774_v1 = vpop.f32.mrf.mxu2  ;;  %v1052_v48 = vpop.f32.mrf.mxu3 }
 0x156   : > { %v775_v8 = vadd.f32 %v774_v1, %v689_v38  ;;  %v4415_v13 = vadd.f32 %v1052_v48, %v770_v36 }
 0x15a   : > { %v694_v53 = vpop.f32.mrf.mxu1 }
 0x15d   : > { %v776_v55 = vpop.f32.mrf.mxu2  ;;  %2944 = vmatmul.msk.bf16.gmra.mxu1 %vm645_vm3, %v4054_v35  ;;  %v1054_v59 = vpop.f32.mrf.mxu3 }
 0x15e   : > { %v777_v34 = vadd.f32 %v776_v55, %v691_v47  ;;  %v4419_v26 = vadd.f32 %v1054_v59, %v772_v21  ;;  %v3129_v59 = vld [vmem:[%s4782_s3 + $0x70] sm:$0xff] }
 0x162   : > { %v696_v31 = vpop.f32.mrf.mxu1  ;;  %2964 = vmatmul.msk.bf16.gmra.mxu2 %vm645_vm3, %v3963_v52 }
 0x163   : > { %2983 = vmatmul.msk.bf16.gmra.mxu3 %vm645_vm3, %v3987_v10 }
 0x165   : > { %v779_v49 = vpop.f32.mrf.mxu2 }
 0x166   : > { %v780_v39 = vadd.f32 %v779_v49, %v694_v53  ;;  %v1057_v17 = vpop.f32.mrf.mxu3 }
 0x167   : > { %v4428_v35 = vadd.f32 %v1057_v17, %v775_v8  ;;  %v3131_v17 = vld [vmem:[%s4782_s3 + $0x80] sm:$0xff] }
 0x16a   : > { %v699_v40 = vpop.f32.mrf.mxu1 }
 0x16d   : > { %v781_v58 = vpop.f32.mrf.mxu2  ;;  %2945 = vmatmul.msk.bf16.gmra.mxu1 %vm645_vm3, %v4149_v50 }
 0x16e   : > { %v782_v44 = vadd.f32 %v781_v58, %v696_v31  ;;  %v1059_v37 = vpop.f32.mrf.mxu3  ;;  %v3132_v31 = vld [vmem:[%s4782_s3 + $0x88] sm:$0xff] }
 0x16f   : > { %v4432_v36 = vadd.f32 %v1059_v37, %v777_v34  ;;  %2200 = vmatpush.bf16.msra.mxu2 %v3132_v31  ;;  %v4835_v31 = vld [vmem:[#allocation2_spill] sm:$0xff] }
 0x172   : > { %v701_v10 = vpop.f32.mrf.mxu1  ;;  %2965 = vmatmul.msk.bf16.gmra.mxu2 %vm645_vm3, %v4086_v6 }
 0x173   : > { %2984 = vmatmul.msk.bf16.gmra.mxu3 %vm645_vm3, %v4170_v32  ;;  %2201 = vmatpush.bf16.msra.mxu2 %v3131_v17 }
 0x175   : > { %v784_v46 = vpop.f32.mrf.mxu2 }
 0x176   : > { %v785_v38 = vadd.f32 %v784_v46, %v699_v40  ;;  %v1062_v11 = vpop.f32.mrf.mxu3 }
 0x177   : > { %v4438_v18 = vadd.f32 %v1062_v11, %v780_v39 }
 0x17a   : > { %v704_v45 = vpop.f32.mrf.mxu1 }
 0x17d   : > { %v786_v21 = vpop.f32.mrf.mxu2  ;;  %2946 = vmatmul.msk.bf16.gmra.mxu1 %vm645_vm3, %v4270_v12  ;;  %v3130_v12 = vld [vmem:[%s4782_s3 + $0x78] sm:$0xff] }
 0x17e   : > { %v787_v50 = vadd.f32 %v786_v21, %v701_v10  ;;  %v1064_v47 = vpop.f32.mrf.mxu3  ;;  %1970 = vmatpush.bf16.msrb.mxu1 %v3130_v12  ;;  %v1618_v12 = vshrl.u32 %v4358_v62, 16 }
 0x17f   : > { %v4442_v1 = vadd.f32 %v1064_v47, %v782_v44 }
 0x182   : > { %v706_v8 = vpop.f32.mrf.mxu1  ;;  %2966 = vmatmul.msk.bf16.gmra.mxu2 %vm645_vm3, %v4213_v43  ;;  %1971 = vmatpush.bf16.msrb.mxu1 %v3129_v59 }
 0x183   : > { %2985 = vmatmul.msk.bf16.gmra.mxu3 %vm645_vm3, %v4242_v16 }
 0x185   : > { %v789_v32 = vpop.f32.mrf.mxu2 }
 0x186   : > { %v790_v48 = vadd.f32 %v789_v32, %v704_v45  ;;  %v1067_v53 = vpop.f32.mrf.mxu3 }
 0x187   : > { %v4448_v55 = vadd.f32 %v1067_v53, %v785_v38 }
 0x18a   : > { %v709_v34 = vpop.f32.mrf.mxu1 }
 0x18d   : > { %v791_v16 = vpop.f32.mrf.mxu2  ;;  %2947 = vmatmul.msk.bf16.gmra.mxu1 %vm645_vm3, %v4346_v61 }
 0x18e   : > { %v792_v30 = vadd.f32 %v791_v16, %v706_v8  ;;  %v1069_v49 = vpop.f32.mrf.mxu3 }
 0x18f   : > { %v4461_v39 = vadd.f32 %v1069_v49, %v787_v50 }
 0x192   : > { %v711_v40 = vpop.f32.mrf.mxu1  ;;  %2967 = vmatmul.msk.bf16.gmra.mxu2 %vm645_vm3, %v4299_v24 }
 0x193   : > { %2986 = vmatmul.msk.bf16.gmra.mxu3 %vm645_vm3, %v4323_v22  ;;  %v1543_v22 = vmul.f32 %v3772_v57, %v4159_v19  ;;  %v1620_v57 = vor.u32 %v1618_v12, %v4382_v9  ;;  %v4841_v12 = vld [vmem:[#allocation6_spill] sm:$0xff] }
 0x195   : > { %v794_v58 = vpop.f32.mrf.mxu2 }
 0x196   : > { %v795_v61 = vadd.f32 %v794_v58, %v709_v34  ;;  %v1072_v44 = vpop.f32.mrf.mxu3  ;;  %v4836_v58 = vld [vmem:[#allocation4_spill] sm:$0xff] }
 0x197   : > { %v4470_v37 = vadd.f32 %v1072_v44, %v790_v48 }
 0x19a   : > { %v714_v10 = vpop.f32.mrf.mxu1 }
 0x19d   : > { %v796_v46 = vpop.f32.mrf.mxu2  ;;  %2948 = vmatmul.msk.bf16.gmra.mxu1 %vm645_vm3, %v4387_v51  ;;  %v1552_v51 = vpack.c.bf16 %v1543_v22, %v1543_v22  ;;  %v4839_v22 = vld [vmem:[#allocation5_spill] sm:$0xff] }
 0x19e   : > { %v797_v38 = vadd.f32 %v796_v46, %v711_v40  ;;  %v1074_v11 = vpop.f32.mrf.mxu3 }
 0x19f   : > { %v4474_v45 = vadd.f32 %v1074_v11, %v792_v30  ;;  %v1622_v34 = vshll.u32 %v1552_v51, 16 }
 0x1a1   : > { %v1624_v49 = vrot.slane %v1622_v34, 1 }
 0x1a2   : > { %v716_v21 = vpop.f32.mrf.mxu1  ;;  %2968 = vmatmul.msk.bf16.gmra.mxu2 %vm645_vm3, %v4356_v2 }
 0x1a3   : > { %2987 = vmatmul.msk.bf16.gmra.mxu3 %vm645_vm3, %v4391_v29  ;;  %v1625_v40 = vsel %vm933_vm5, %v1620_v57, %v1624_v49  ;;  %v4843_v49 = vld [vmem:[#allocation8_spill] sm:$0xff] }
 0x1a5   : > { %v799_v50 = vpop.f32.mrf.mxu2 }
 0x1a6   : > { %v800_v47 = vadd.f32 %v799_v50, %v714_v10  ;;  %v1077_v8 = vpop.f32.mrf.mxu3 }
 0x1a7   : > { %v4482_v32 = vadd.f32 %v1077_v8, %v795_v61  ;;  %v4837_v61 = vld [vmem:[#allocation3_spill] sm:$0xff] }
 0x1aa   : > { %v1309_v48 = vpop.f32.mrf.mxu1 }
 0x1ab   : > { %v1349_v53 = vadd.f32 %v1309_v48, %v4403_v41  ;;  %v4838_v41 = vpack.c.bf16 %v4836_v58, %v4837_v61  ;;  %v4844_v61 = vld [vmem:[#allocation10_spill] sm:$0xff] }
 0x1ad   : > { %v801_v59 = vpop.f32.mrf.mxu2  ;;  %3021 = vmatmul.msk.bf16.vlgmr.msrb.gmra.mxu1 %vm645_vm3, %v4835_v31 }
 0x1ae   : > { %v802_v29 = vadd.f32 %v801_v59, %v716_v21  ;;  %v1079_v16 = vpop.f32.mrf.mxu3 }
 0x1af   : > { %v4489_v30 = vadd.f32 %v1079_v16, %v797_v38 }
 0x1b2   : > { %v1311_v17 = vpop.f32.mrf.mxu1  ;;  %3041 = vmatmul.msk.bf16.vlgmr.msra.gmra.mxu2 %vm645_vm3, %v4838_v41  ;;  %v4845_v41 = vld [vmem:[#allocation9_spill] sm:$0xff] }
 0x1b3   : > { %v1350_v62 = vadd.f32 %v1311_v17, %v4409_v3  ;;  %2988 = vmatmul.msk.bf16.gmra.mxu3 %vm645_vm3, %v1625_v40  ;;  %v4840_v3 = vld [vmem:[#allocation7_spill] sm:$0xff] }
 0x1b4   : > { %v4842_v34 = vpack.c.bf16 %v4840_v3, %v4841_v12  ;;  %v4848_v3 = vld [vmem:[#allocation13_spill] sm:$0xff]  ;;  %v4849_v12 = vld [vmem:[#allocation12_spill] sm:$0xff] }
 0x1b5   : > { %v1471_v44 = vpop.f32.mrf.mxu2 }
 0x1b6   : > { %v1082_v10 = vpop.f32.mrf.mxu3  ;;  %v1511_v46 = vadd.f32 %v1471_v44, %v1349_v53 }
 0x1b7   : > { %v4498_v11 = vadd.f32 %v1082_v10, %v800_v47 }
 0x1ba   : > { %v1314_v9 = vpop.f32.mrf.mxu1 }
 0x1bb   : > { %v1351_v38 = vadd.f32 %v1314_v9, %v4415_v13 }
 0x1bd   : > { %v1473_v21 = vpop.f32.mrf.mxu2  ;;  %3022 = vmatmul.msk.bf16.gmra.mxu1 %vm645_vm3, %v4839_v22  ;;  %v4847_v22 = vld [vmem:[#allocation11_spill] sm:$0xff] }
 0x1be   : > { %v1084_v50 = vpop.f32.mrf.mxu3  ;;  %v1512_v8 = vadd.f32 %v1473_v21, %v1350_v62 }
 0x1bf   : > { %v4503_v51 = vadd.f32 %v1084_v50, %v802_v29 }
 0x1c2   : > { %v1316_v48 = vpop.f32.mrf.mxu1  ;;  %3042 = vmatmul.msk.bf16.gmra.mxu2 %vm645_vm3, %v4842_v34 }
 0x1c3   : > { %v1352_v47 = vadd.f32 %v1316_v48, %v4419_v26  ;;  %3061 = vmatmul.msk.bf16.vlgmr.msra.gmra.mxu3 %vm645_vm3, %v3658_v14  ;;  %v4846_v14 = vpack.c.bf16 %v4844_v61, %v4845_v41 }
 0x1c5   : > { %v1476_v13 = vpop.f32.mrf.mxu2 }
 0x1c6   : > { %v1513_v53 = vadd.f32 %v1476_v13, %v1351_v38  ;;  %v1671_v59 = vpop.f32.mrf.mxu3 }
 0x1c7   : > { %v4512_v31 = vadd.f32 %v1671_v59, %v1511_v46 }
 0x1ca   : > { %v1319_v16 = vpop.f32.mrf.mxu1 }
 0x1cb   : > { %v1353_v29 = vadd.f32 %v1319_v16, %v4428_v35 }
 0x1cd   : > { %v1478_v57 = vpop.f32.mrf.mxu2  ;;  %3023 = vmatmul.msk.bf16.gmra.mxu1 %vm645_vm3, %v4843_v49 }
 0x1ce   : > { %v1514_v17 = vadd.f32 %v1478_v57, %v1352_v47  ;;  %v1673_v40 = vpop.f32.mrf.mxu3  ;;  %v4851_v57 = vld [vmem:[#allocation14_spill] sm:$0xff] }
 0x1cf   : > { %v4517_v58 = vadd.f32 %v1673_v40, %v1512_v8 }
 0x1d2   : > { %v1321_v26 = vpop.f32.mrf.mxu1  ;;  %3043 = vmatmul.msk.bf16.gmra.mxu2 %vm645_vm3, %v4846_v14 }
 0x1d3   : > { %v1354_v62 = vadd.f32 %v1321_v26, %v4432_v36  ;;  %3062 = vmatmul.msk.bf16.gmra.mxu3 %vm645_vm3, %v3727_v56  ;;  %v4850_v56 = vpack.c.bf16 %v4848_v3, %v4849_v12 }
 0x1d5   : > { %v1481_v35 = vpop.f32.mrf.mxu2 }
 0x1d6   : > { %v1515_v44 = vadd.f32 %v1481_v35, %v1353_v29  ;;  %v1676_v10 = vpop.f32.mrf.mxu3 }
 0x1d7   : > { %v4526_v46 = vadd.f32 %v1676_v10, %v1513_v53  ;;  %v4852_v10 = vld [vmem:[#allocation15_spill] sm:$0xff] }
 0x1da   : > { %v1324_v9 = vpop.f32.mrf.mxu1 }
 0x1db   : > { %v1355_v38 = vadd.f32 %v1324_v9, %v4438_v18 }
 0x1dd   : > { %v1483_v21 = vpop.f32.mrf.mxu2  ;;  %3024 = vmatmul.msk.bf16.gmra.mxu1 %vm645_vm3, %v4847_v22 }
 0x1de   : > { %v1516_v50 = vadd.f32 %v1483_v21, %v1354_v62  ;;  %v1678_v8 = vpop.f32.mrf.mxu3 }
 0x1df   : > { %v4531_v48 = vadd.f32 %v1678_v8, %v1514_v17 }
 0x1e2   : > { %v1326_v36 = vpop.f32.mrf.mxu1  ;;  %3044 = vmatmul.msk.bf16.gmra.mxu2 %vm645_vm3, %v4850_v56 }
 0x1e3   : > { %v1356_v34 = vadd.f32 %v1326_v36, %v4442_v1  ;;  %3063 = vmatmul.msk.bf16.gmra.mxu3 %vm645_vm3, %v3862_v5 }
 0x1e5   : > { %v1486_v18 = vpop.f32.mrf.mxu2 }
 0x1e6   : > { %v1517_v47 = vadd.f32 %v1486_v18, %v1355_v38  ;;  %v1681_v13 = vpop.f32.mrf.mxu3  ;;  %v2063_v18 = vsel %vm1103_vm4, %v2060_v20, %v2062_v42 }
 0x1e7   : > { %v4540_v53 = vadd.f32 %v1681_v13, %v1515_v44 }
 0x1ea   : > { %v1329_v59 = vpop.f32.mrf.mxu1 }
 0x1eb   : > { %v1357_v16 = vadd.f32 %v1329_v59, %v4448_v55 }
 0x1ed   : > { %v1488_v29 = vpop.f32.mrf.mxu2  ;;  %3025 = vmatmul.msk.bf16.gmra.mxu1 %vm645_vm3, %v4851_v57 }
 0x1ee   : > { %v1518_v49 = vadd.f32 %v1488_v29, %v1356_v34  ;;  %v1683_v17 = vpop.f32.mrf.mxu3  ;;  %v2112_v34 = vpop.permute.xlu0 %2111 }
 0x1ef   : > { %v4545_v40 = vadd.f32 %v1683_v17, %v1516_v50 }
 0x1f2   : > { %v1331_v1 = vpop.f32.mrf.mxu1  ;;  %3045 = vmatmul.msk.bf16.gmra.mxu2 %vm645_vm3, %v2149_v7 }
 0x1f3   : > { %v1358_v26 = vadd.f32 %v1331_v1, %v4461_v39  ;;  %3064 = vmatmul.msk.bf16.gmra.mxu3 %vm645_vm3, %v3963_v52 }
 0x1f5   : > { %v1491_v55 = vpop.f32.mrf.mxu2 }
 0x1f6   : > { %v1519_v61 = vadd.f32 %v1491_v55, %v1357_v16  ;;  %v1686_v41 = vpop.f32.mrf.mxu3  ;;  %v2144_v16 = vmul.f32 %v2112_v34, %v2080_v33 }
 0x1f7   : > { %v4554_v14 = vadd.f32 %v1686_v41, %v1517_v47  ;;  %v1940_v47 = vpack.c.bf16 %v4363_v15, %v4159_v19 }
 0x1fa   : > { %v1334_v62 = vpop.f32.mrf.mxu1 }
 0x1fb   : > { %v1359_v35 = vadd.f32 %v1334_v62, %v4470_v37 }
 0x1fd   : > { %v1493_v44 = vpop.f32.mrf.mxu2  ;;  %3026 = vmatmul.msk.bf16.gmra.mxu1 %vm645_vm3, %v4852_v10  ;;  %v3140_v10 = vld [vmem:[%s4783_s4 + $0x28] sm:$0xff] }
 0x1fe   : > { %v1520_v23 = vadd.f32 %v1493_v44, %v1358_v26  ;;  %v1688_v63 = vpop.f32.mrf.mxu3  ;;  %2634 = vmatpush.bf16.msra.mxu0 %v3140_v10 }
 0x1ff   : > { %v4559_v7 = vadd.f32 %v1688_v63, %v1518_v49 }
 0x202   : > { %v1336_v39 = vpop.f32.mrf.mxu1  ;;  %3046 = vmatmul.msk.bf16.gmra.mxu2 %vm645_vm3, %v2150_v27 }
 0x203   : > { %v1360_v9 = vadd.f32 %v1336_v39, %v4474_v45  ;;  %3065 = vmatmul.msk.bf16.gmra.mxu3 %vm645_vm3, %v4086_v6  ;;  %v1883_v45 = vpop.f32.mrf.mxu0 }
 0x204   : > { %v1923_v39 = vadd.f32 %v1883_v45, %v4512_v31 }
 0x205   : > { %v1496_v37 = vpop.f32.mrf.mxu2 }
 0x206   : > { %v1521_v38 = vadd.f32 %v1496_v37, %v1359_v35  ;;  %v1691_v21 = vpop.f32.mrf.mxu3 }
 0x207   : > { %v4568_v22 = vadd.f32 %v1691_v21, %v1519_v61 }
 0x20a   : > { %v1339_v50 = vpop.f32.mrf.mxu1 }
 0x20b   : > { %v1361_v8 = vadd.f32 %v1339_v50, %v4482_v32  ;;  %v1885_v13 = vpop.f32.mrf.mxu0 }
 0x20d   : > { %v1498_v36 = vpop.f32.mrf.mxu2  ;;  %3027 = vmatmul.msk.bf16.gmra.mxu1 %vm645_vm3, %v1939_v25 }
 0x20e   : > { %v1522_v4 = vadd.f32 %v1498_v36, %v1360_v9  ;;  %v1693_v60 = vpop.f32.mrf.mxu3 }
 0x20f   : > { %v4575_v27 = vadd.f32 %v1693_v60, %v1520_v23  ;;  %v4606_v23 = vpop.permute.xlu1 %2327  ;;  %v1924_v60 = vadd.f32 %v1885_v13, %v4517_v58 }
 0x212   : > { %v1341_v3 = vpop.f32.mrf.mxu1  ;;  %3047 = vmatmul.msk.bf16.gmra.mxu2 %vm645_vm3, %v2151_v54  ;;  %v2110_v54 = vpop.permute.xlu2 %2109 }
 0x213   : > { %v1362_v12 = vadd.f32 %v1341_v3, %v4489_v30  ;;  %3066 = vmatmul.msk.bf16.gmra.mxu3 %vm645_vm3, %v4213_v43  ;;  %v2143_v59 = vmul.f32 %v2110_v54, %v2063_v18  ;;  %v1888_v15 = vpop.f32.mrf.mxu0 }
 0x214   : > { %v1925_v33 = vadd.f32 %v1888_v15, %v4526_v46 }
 0x215   : > { %v1501_v28 = vpop.f32.mrf.mxu2  ;;  %v2152_v20 = vpack.c.bf16 %v2144_v16, %v2143_v59 }
 0x216   : > { %v1523_v25 = vadd.f32 %v1501_v28, %v1361_v8  ;;  %v1696_v32 = vpop.f32.mrf.mxu3 }
 0x217   : > { %v4585_v56 = vadd.f32 %v1696_v32, %v1521_v38  ;;  %v4615_v36 = vpop.permute.xlu1 %2259 }
 0x21a   : > { %v1344_v0 = vpop.f32.mrf.mxu1 }
 0x21b   : > { %v1363_v30 = vadd.f32 %v1344_v0, %v4498_v11  ;;  %v1890_v63 = vpop.f32.mrf.mxu0 }
 0x21c   : > { %v1926_v46 = vadd.f32 %v1890_v63, %v4531_v48 }
 0x21d   : > { %v1503_v29 = vpop.f32.mrf.mxu2  ;;  %3028 = vmatmul.msk.bf16.gmra.mxu1 %vm645_vm3, %v1940_v47 }
 0x21e   : > { %v1524_v57 = vadd.f32 %v1503_v29, %v1362_v12  ;;  %v1698_v49 = vpop.f32.mrf.mxu3 }
 0x21f   : > { %v4595_v17 = vadd.f32 %v1698_v49, %v1522_v4 }
 0x222   : > { %v1346_v1 = vpop.f32.mrf.mxu1  ;;  %3048 = vmatmul.msk.bf16.gmra.mxu2 %vm645_vm3, %v2152_v20  ;;  %v3139_v20 = vld [vmem:[%s4783_s4 + $0x20] sm:$0xff] }
 0x223   : > { %v1364_v26 = vadd.f32 %v1346_v1, %v4503_v51  ;;  %3067 = vmatmul.msk.bf16.gmra.mxu3 %vm645_vm3, %v4299_v24  ;;  %v1893_v4 = vpop.f32.mrf.mxu0  ;;  %2635 = vmatpush.bf16.msra.mxu0 %v3139_v20  ;;  %v3138_v20 = vld [vmem:[%s4783_s4 + $0x18] sm:$0xff] }
 0x224   : > { %v1927_v48 = vadd.f32 %v1893_v4, %v4540_v53 }
 0x225   : > { %v1506_v19 = vpop.f32.mrf.mxu2 }
 0x226   : > { %v1525_v11 = vadd.f32 %v1506_v19, %v1363_v30  ;;  %v1701_v55 = vpop.f32.mrf.mxu3 }
 0x227   : > { %v4601_v61 = vadd.f32 %v1701_v55, %v1523_v25  ;;  %2636 = vmatpush.bf16.msra.mxu0 %v3138_v20 }
 0x22a   : > { %v1973_v41 = vpop.f32.mrf.mxu1 }
 0x22b   : > { %v2013_v37 = vadd.f32 %v1973_v41, %v1923_v39  ;;  %v1895_v30 = vpop.f32.mrf.mxu0 }
 0x22c   : > { %v1928_v53 = vadd.f32 %v1895_v30, %v4545_v40 }
 0x22d   : > { %v1508_v62 = vpop.f32.mrf.mxu2 }
 0x22e   : > { %v1526_v35 = vadd.f32 %v1508_v62, %v1364_v26  ;;  %v1703_v44 = vpop.f32.mrf.mxu3 }
 0x22f   : > { %v4608_v51 = vadd.f32 %v1703_v44, %v1524_v57 }
 0x232   : > { %v1975_v9 = vpop.f32.mrf.mxu1 }
 0x233   : > { %3068 = vmatmul.msk.bf16.gmra.mxu3 %vm645_vm3, %v4356_v2  ;;  %v2014_v42 = vadd.f32 %v1975_v9, %v1924_v60  ;;  %v1898_v41 = vpop.f32.mrf.mxu0 }
 0x235   : > { %v2203_v38 = vpop.f32.mrf.mxu2 }
 0x236   : > { %v1706_v21 = vpop.f32.mrf.mxu3  ;;  %v2243_v50 = vadd.f32 %v2203_v38, %v2013_v37 }
 0x237   : > { %v4613_v8 = vadd.f32 %v1706_v21, %v1525_v11 }
 0x238   : > { %v2262_v3 = vadd.f32 %v4615_v36, %v2243_v50 }
 0x23a   : > { %v1978_v12 = vpop.f32.mrf.mxu1  ;;  %v2278_v45 = vmax.f32 %v2262_v3, 0.0 }
 0x23b   : > { %v2015_v47 = vadd.f32 %v1978_v12, %v1925_v33  ;;  %v1900_v33 = vpop.f32.mrf.mxu0 }
 0x23c   : > { %v2294_v18 = vpack.c.bf16 %v2278_v45, %v2278_v45 }
 0x23d   : > { %v2205_v31 = vpop.f32.mrf.mxu2 }
 0x23e   : > { %v1708_v28 = vpop.f32.mrf.mxu3  ;;  %v2244_v25 = vadd.f32 %v2205_v31, %v2014_v42  ;;  %v2427_v59 = vunpack.c.l.b16 %v2294_v18 }
 0x23f   : > { %v4619_v32 = vadd.f32 %v1708_v28, %v1526_v35 }
 0x240   : > { %v2263_v34 = vadd.f32 %v4615_v36, %v2244_v25 }
 0x242   : > { %v2279_v0 = vmax.f32 %v2263_v34, 0.0  ;;  %v1980_v54 = vpop.f32.mrf.mxu1 }
 0x243   : > { %v2016_v15 = vadd.f32 %v1980_v54, %v1926_v46  ;;  %v1903_v30 = vpop.f32.mrf.mxu0 }
 0x244   : > { %v2295_v58 = vpack.c.bf16 %v2279_v0, %v2279_v0 }
 0x245   : > { %v2208_v13 = vpop.f32.mrf.mxu2 }
 0x246   : > { %v2428_v16 = vunpack.c.l.b16 %v2295_v58  ;;  %v2245_v29 = vadd.f32 %v2208_v13, %v2015_v47  ;;  %v2339_v57 = vpop.f32.mrf.mxu3 }
 0x247   : > { %v2340_v1 = vadd.f32 %v2339_v57, %v4606_v23 }
 0x248   : > { %v4623_v49 = vpack.c.b16 %v2428_v16, %v2427_v59  ;;  %v2264_v26 = vadd.f32 %v4615_v36, %v2245_v29 }
 0x249   : > { %v2379_v11 = vmax.f32 %v2340_v1, 0.0 }
 0x24a   : > { %v1983_v19 = vpop.f32.mrf.mxu1  ;;  %v2280_v62 = vmax.f32 %v2264_v26, 0.0 }
 0x24b   : > { %v2395_v9 = vpack.c.bf16 %v2379_v11, %v2379_v11  ;;  %v2017_v60 = vadd.f32 %v1983_v19, %v1927_v48 }
 0x24c   : > { %v2296_v38 = vpack.c.bf16 %v2280_v62, %v2280_v62 }
 0x24d   : > { %v2210_v55 = vpop.f32.mrf.mxu2  ;;  %v2483_v12 = vunpack.c.l.b16 %v2395_v9 }
 0x24e   : > { %v2246_v35 = vadd.f32 %v2210_v55, %v2016_v15  ;;  %v2341_v44 = vpop.f32.mrf.mxu3  ;;  %v2429_v45 = vunpack.c.l.b16 %v2296_v38  ;;  %v1929_v15 = vadd.f32 %v1898_v41, %v4554_v14  ;;  %v1930_v14 = vadd.f32 %v1900_v33, %v4559_v7 }
 0x24f   : > { %v2342_v10 = vadd.f32 %v2341_v44, %v4606_v23 }
 0x250   : > { %v2265_v39 = vadd.f32 %v4615_v36, %v2246_v35 }
 0x251   : > { %v2380_v37 = vmax.f32 %v2342_v10, 0.0 }
 0x252   : > { %v2281_v63 = vmax.f32 %v2265_v39, 0.0  ;;  %v1985_v21 = vpop.f32.mrf.mxu1 }
 0x253   : > { %v2396_v50 = vpack.c.bf16 %v2380_v37, %v2380_v37  ;;  %v2018_v58 = vadd.f32 %v1985_v21, %v1928_v53 }
 0x254   : > { %v2297_v3 = vpack.c.bf16 %v2281_v63, %v2281_v63 }
 0x255   : > { %v2484_v42 = vunpack.c.l.b16 %v2396_v50  ;;  %v2213_v31 = vpop.f32.mrf.mxu2 }
 0x256   : > { %v2430_v28 = vunpack.c.l.b16 %v2297_v3  ;;  %v2247_v25 = vadd.f32 %v2213_v31, %v2017_v60  ;;  %v2344_v34 = vpop.f32.mrf.mxu3  ;;  %v1905_v3 = vpop.f32.mrf.mxu0 }
 0x257   : > { %v2499_v18 = vpack.c.b16 %v2484_v42, %v2483_v12  ;;  %v2345_v54 = vadd.f32 %v2344_v34, %v4606_v23  ;;  %v3137_v34 = vld [vmem:[%s4783_s4 + $0x10] sm:$0xff] }
 0x258   : > { %v4634_v0 = vpack.c.b16 %v2430_v28, %v2429_v45  ;;  %v2266_v4 = vadd.f32 %v4615_v36, %v2247_v25  ;;  %2637 = vmatpush.bf16.msra.mxu0 %v3137_v34 }
 0x259   : > { %2507 = vrot.lane.b32.xlu0 %v2499_v18, %s3283_s29  ;;  %v2381_v13 = vmax.f32 %v2345_v54, 0.0 }
 0x25a   : > { %v1988_v47 = vpop.f32.mrf.mxu1  ;;  %v2282_v16 = vmax.f32 %v2266_v4, 0.0  ;;  %v1931_v4 = vadd.f32 %v1903_v30, %v4568_v22  ;;  %v1932_v22 = vadd.f32 %v1905_v3, %v4575_v27 }
 0x25b   : > { %v2397_v26 = vpack.c.bf16 %v2381_v13, %v2381_v13  ;;  %v2019_v35 = vadd.f32 %v1988_v47, %v1929_v15 }
 0x25c   : > { %v2298_v19 = vpack.c.bf16 %v2282_v16, %v2282_v16 }
 0x25d   : > { %v2215_v59 = vpop.f32.mrf.mxu2  ;;  %v2485_v10 = vunpack.c.l.b16 %v2397_v26 }
 0x25e   : > { %v2248_v29 = vadd.f32 %v2215_v59, %v2018_v58  ;;  %v2346_v57 = vpop.f32.mrf.mxu3  ;;  %v2431_v37 = vunpack.c.l.b16 %v2298_v19 }
 0x25f   : > { %v2347_v1 = vadd.f32 %v2346_v57, %v4606_v23 }
 0x260   : > { %v2267_v46 = vadd.f32 %v4615_v36, %v2248_v29 }
 0x261   : > { %v2382_v40 = vmax.f32 %v2347_v1, 0.0  ;;  %2455 = vrot.lane.b32.xlu0 %v3862_v5, %s3284_s11  ;;  %v1908_v1 = vpop.f32.mrf.mxu0 }
 0x262   : > { %v2283_v11 = vmax.f32 %v2267_v46, 0.0  ;;  %v1990_v55 = vpop.f32.mrf.mxu1 }
 0x263   : > { %v2398_v62 = vpack.c.bf16 %v2382_v40, %v2382_v40  ;;  %v2020_v12 = vadd.f32 %v1990_v55, %v1930_v14 }
 0x264   : > { %v2299_v44 = vpack.c.bf16 %v2283_v11, %v2283_v11 }
 0x265   : > { %v2486_v39 = vunpack.c.l.b16 %v2398_v62  ;;  %v2218_v9 = vpop.f32.mrf.mxu2 }
 0x266   : > { %v2432_v38 = vunpack.c.l.b16 %v2299_v44  ;;  %v2249_v48 = vadd.f32 %v2218_v9, %v2019_v35  ;;  %v2349_v63 = vpop.f32.mrf.mxu3 }
 0x267   : > { %v2500_v21 = vpack.c.b16 %v2486_v39, %v2485_v10  ;;  %v2350_v5 = vadd.f32 %v2349_v63, %v4606_v23 }
 0x268   : > { %v4648_v50 = vpack.c.b16 %v2432_v38, %v2431_v37  ;;  %v2268_v41 = vadd.f32 %v4615_v36, %v2249_v48 }
 0x269   : > { %2509 = vrot.lane.b32.xlu2 %v2500_v21, %s3283_s29  ;;  %v2383_v42 = vmax.f32 %v2350_v5, 0.0  ;;  %v1910_v38 = vpop.f32.mrf.mxu0  ;;  %v1933_v5 = vadd.f32 %v1908_v1, %v4585_v56 }
 0x26a   : > { %v1993_v60 = vpop.f32.mrf.mxu1  ;;  %v2284_v45 = vmax.f32 %v2268_v41, 0.0 }
 0x26b   : > { %v2399_v7 = vpack.c.bf16 %v2383_v42, %v2383_v42  ;;  %v2021_v59 = vadd.f32 %v1993_v60, %v1931_v4 }
 0x26c   : > { %v2300_v53 = vpack.c.bf16 %v2284_v45, %v2284_v45 }
 0x26d   : > { %v2220_v31 = vpop.f32.mrf.mxu2  ;;  %v2487_v29 = vunpack.c.l.b16 %v2399_v7 }
 0x26e   : > { %v2250_v28 = vadd.f32 %v2220_v31, %v2020_v12  ;;  %v2351_v25 = vpop.f32.mrf.mxu3  ;;  %v2433_v46 = vunpack.c.l.b16 %v2300_v53  ;;  %v1934_v53 = vadd.f32 %v1910_v38, %v4595_v17 }
 0x26f   : > { %v2352_v18 = vadd.f32 %v2351_v25, %v4606_v23 }
 0x270   : > { %v2269_v54 = vadd.f32 %v4615_v36, %v2250_v28 }
 0x271   : > { %v2384_v33 = vmax.f32 %v2352_v18, 0.0  ;;  %2457 = vrot.lane.b32.xlu2 %v3963_v52, %s3284_s11 }
 0x272   : > { %v2285_v47 = vmax.f32 %v2269_v54, 0.0  ;;  %v1995_v58 = vpop.f32.mrf.mxu1 }
 0x273   : > { %v2400_v13 = vpack.c.bf16 %v2384_v33, %v2384_v33  ;;  %v2022_v62 = vadd.f32 %v1995_v58, %v1932_v22  ;;  %v1913_v33 = vpop.f32.mrf.mxu0 }
 0x274   : > { %v2301_v16 = vpack.c.bf16 %v2285_v47, %v2285_v47 }
 0x275   : > { %v2488_v57 = vunpack.c.l.b16 %v2400_v13  ;;  %v2223_v20 = vpop.f32.mrf.mxu2 }
 0x276   : > { %v2434_v26 = vunpack.c.l.b16 %v2301_v16  ;;  %v2251_v40 = vadd.f32 %v2223_v20, %v2021_v59  ;;  %v2354_v19 = vpop.f32.mrf.mxu3 }
 0x277   : > { %v2501_v15 = vpack.c.b16 %v2488_v57, %v2487_v29  ;;  %v2355_v52 = vadd.f32 %v2354_v19, %v4606_v23 }
 0x278   : > { %v4662_v11 = vpack.c.b16 %v2434_v26, %v2433_v46  ;;  %v2270_v30 = vadd.f32 %v4615_v36, %v2251_v40  ;;  %v1935_v40 = vadd.f32 %v1913_v33, %v4601_v61 }
 0x279   : > { %2511 = vrot.lane.b32.xlu1 %v2501_v15, %s3283_s29  ;;  %v2385_v35 = vmax.f32 %v2355_v52, 0.0 }
 0x27a   : > { %v1998_v55 = vpop.f32.mrf.mxu1  ;;  %v2286_v10 = vmax.f32 %v2270_v30, 0.0 }
 0x27b   : > { %v2401_v63 = vpack.c.bf16 %v2385_v35, %v2385_v35  ;;  %v2023_v3 = vadd.f32 %v1998_v55, %v1933_v5  ;;  %v1915_v52 = vpop.f32.mrf.mxu0 }
 0x27c   : > { %v2302_v27 = vpack.c.bf16 %v2286_v10, %v2286_v10  ;;  %v1936_v61 = vadd.f32 %v1915_v52, %v4608_v51 }
 0x27d   : > { %v2225_v44 = vpop.f32.mrf.mxu2  ;;  %v2489_v42 = vunpack.c.l.b16 %v2401_v63 }
 0x27e   : > { %v2252_v39 = vadd.f32 %v2225_v44, %v2022_v62  ;;  %v2356_v9 = vpop.f32.mrf.mxu3  ;;  %v2435_v28 = vunpack.c.l.b16 %v2302_v27 }
 0x27f   : > { %v2357_v37 = vadd.f32 %v2356_v9, %v4606_v23 }
 0x280   : > { %v2271_v48 = vadd.f32 %v4615_v36, %v2252_v39 }
 0x281   : > { %v2386_v21 = vmax.f32 %v2357_v37, 0.0  ;;  %2459 = vrot.lane.b32.xlu1 %v4086_v6, %s3284_s11  ;;  %v3136_v6 = vld [vmem:[%s4783_s4 + $0x8] sm:$0xff] }
 0x282   : > { %v2287_v14 = vmax.f32 %v2271_v48, 0.0  ;;  %v2000_v41 = vpop.f32.mrf.mxu1  ;;  %2638 = vmatpush.bf16.msra.mxu0 %v3136_v6 }
 0x283   : > { %v2402_v60 = vpack.c.bf16 %v2386_v21, %v2386_v21  ;;  %v2024_v58 = vadd.f32 %v2000_v41, %v1934_v53 }
 0x284   : > { %v2303_v12 = vpack.c.bf16 %v2287_v14, %v2287_v14  ;;  %v3135_v14 = vld [vmem:[%s4783_s4] sm:$0xff] }
 0x285   : > { %v2490_v31 = vunpack.c.l.b16 %v2402_v60  ;;  %v2228_v45 = vpop.f32.mrf.mxu2 }
 0x286   : > { %v2436_v25 = vunpack.c.l.b16 %v2303_v12  ;;  %v2253_v34 = vadd.f32 %v2228_v45, %v2023_v3  ;;  %v2359_v18 = vpop.f32.mrf.mxu3  ;;  %v1918_v12 = vpop.f32.mrf.mxu0  ;;  %2639 = vmatpush.bf16.msra.mxu0 %v3135_v14 }
 0x287   : > { %v2502_v54 = vpack.c.b16 %v2490_v31, %v2489_v42  ;;  %v2360_v56 = vadd.f32 %v2359_v18, %v4606_v23 }
 0x288   : > { %v4673_v7 = vpack.c.b16 %v2436_v25, %v2435_v28  ;;  %v2272_v4 = vadd.f32 %v4615_v36, %v2253_v34  ;;  %v1937_v34 = vadd.f32 %v1918_v12, %v4613_v8  ;;  %v2452_v12 = vpop.permute.xlu2 %2451 }
 0x289   : > { %2513 = vrot.lane.b32.xlu0 %v2502_v54, %s3283_s29  ;;  %v2387_v13 = vmax.f32 %v2360_v56, 0.0 }
 0x28a   : > { %v2003_v47 = vpop.f32.mrf.mxu1  ;;  %v2288_v16 = vmax.f32 %v2272_v4, 0.0 }
 0x28b   : > { %v2403_v46 = vpack.c.bf16 %v2387_v13, %v2387_v13  ;;  %v2025_v22 = vadd.f32 %v2003_v47, %v1935_v40 }
 0x28c   : > { %v2304_v17 = vpack.c.bf16 %v2288_v16, %v2288_v16 }
 0x28d   : > { %v2230_v59 = vpop.f32.mrf.mxu2  ;;  %v2491_v55 = vunpack.c.l.b16 %v2403_v46 }
 0x28e   : > { %v2254_v29 = vadd.f32 %v2230_v59, %v2024_v58  ;;  %v2361_v57 = vpop.f32.mrf.mxu3  ;;  %v2437_v10 = vunpack.c.l.b16 %v2304_v17 }
 0x28f   : > { %v2362_v20 = vadd.f32 %v2361_v57, %v4606_v23  ;;  %v1920_v57 = vpop.f32.mrf.mxu0 }
 0x290   : > { %v2273_v1 = vadd.f32 %v4615_v36, %v2254_v29  ;;  %v1938_v8 = vadd.f32 %v1920_v57, %v4619_v32 }
 0x291   : > { %v2388_v26 = vmax.f32 %v2362_v20, 0.0  ;;  %2461 = vrot.lane.b32.xlu0 %v4213_v43, %s3284_s11 }
 0x292   : > { %v2289_v19 = vmax.f32 %v2273_v1, 0.0  ;;  %v2005_v35 = vpop.f32.mrf.mxu1 }
 0x293   : > { %v2404_v15 = vpack.c.bf16 %v2388_v26, %v2388_v26  ;;  %v2026_v21 = vadd.f32 %v2005_v35, %v1936_v61 }
 0x294   : > { %v2305_v30 = vpack.c.bf16 %v2289_v19, %v2289_v19 }
 0x295   : > { %v2492_v62 = vunpack.c.l.b16 %v2404_v15  ;;  %v2233_v44 = vpop.f32.mrf.mxu2 }
 0x296   : > { %v2438_v39 = vunpack.c.l.b16 %v2305_v30  ;;  %v2255_v9 = vadd.f32 %v2233_v44, %v2025_v22  ;;  %v2364_v37 = vpop.f32.mrf.mxu3 }
 0x297   : > { %v2503_v38 = vpack.c.b16 %v2492_v62, %v2491_v55  ;;  %v2365_v43 = vadd.f32 %v2364_v37, %v4606_v23 }
 0x298   : > { %v4687_v48 = vpack.c.b16 %v2438_v39, %v2437_v10  ;;  %v2274_v63 = vadd.f32 %v4615_v36, %v2255_v9 }
 0x299   : > { %2515 = vrot.lane.b32.xlu2 %v2503_v38, %s3283_s29  ;;  %v2389_v27 = vmax.f32 %v2365_v43, 0.0 }
 0x29a   : > { %v2290_v41 = vmax.f32 %v2274_v63, 0.0  ;;  %v2008_v42 = vpop.f32.mrf.mxu1 }
 0x29b   : > { %v2405_v51 = vpack.c.bf16 %v2389_v27, %v2389_v27  ;;  %v2027_v6 = vadd.f32 %v2008_v42, %v1937_v34 }
 0x29c   : > { %v2306_v25 = vpack.c.bf16 %v2290_v41, %v2290_v41 }
 0x29d   : > { %v2235_v5 = vpop.f32.mrf.mxu2  ;;  %v2493_v33 = vunpack.c.l.b16 %v2405_v51  ;;  %v2454_v51 = vpop.permute.xlu1 %2453 }
 0x29e   : > { %v2256_v60 = vadd.f32 %v2235_v5, %v2026_v21  ;;  %v2366_v3 = vpop.f32.mrf.mxu3  ;;  %v2439_v47 = vunpack.c.l.b16 %v2306_v25 }
 0x29f   : > { %v2367_v31 = vadd.f32 %v2366_v3, %v4606_v23 }
 0x2a0   : > { %v2275_v45 = vadd.f32 %v4615_v36, %v2256_v60 }
 0x2a1   : > { %v2390_v28 = vmax.f32 %v2367_v31, 0.0  ;;  %2463 = vrot.lane.b32.xlu2 %v4299_v24, %s3284_s11  ;;  %v2525_v31 = vsel %vm645_vm3, %v4623_v49, %v2452_v12 }
 0x2a2   : > { %v2291_v18 = vmax.f32 %v2275_v45, 0.0  ;;  %v2010_v20 = vpop.f32.mrf.mxu1 }
 0x2a3   : > { %v2406_v54 = vpack.c.bf16 %v2390_v28, %v2390_v28  ;;  %v2028_v46 = vadd.f32 %v2010_v20, %v1938_v8  ;;  %v2528_v28 = vsel %vm645_vm3, %v4634_v0, %v2454_v51 }
 0x2a4   : > { %v2307_v56 = vpack.c.bf16 %v2291_v18, %v2291_v18 }
 0x2a5   : > { %v2494_v53 = vunpack.c.l.b16 %v2406_v54  ;;  %v2238_v4 = vpop.f32.mrf.mxu2 }
 0x2a6   : > { %v2440_v58 = vunpack.c.l.b16 %v2307_v56  ;;  %v2257_v13 = vadd.f32 %v2238_v4, %v2027_v6  ;;  %v2369_v59 = vpop.f32.mrf.mxu3 }
 0x2a7   : > { %v2504_v16 = vpack.c.b16 %v2494_v53, %v2493_v33  ;;  %v2370_v24 = vadd.f32 %v2369_v59, %v4606_v23 }
 0x2a8   : > { %v4701_v29 = vpack.c.b16 %v2440_v58, %v2439_v47  ;;  %v2276_v1 = vadd.f32 %v4615_v36, %v2257_v13 }
 0x2a9   : > { %2517 = vrot.lane.b32.xlu1 %v2504_v16, %s3283_s29  ;;  %v2391_v26 = vmax.f32 %v2370_v24, 0.0 }
 0x2aa   : > { %v2292_v40 = vmax.f32 %v2276_v1, 0.0 }
 0x2ab   : > { %v2407_v30 = vpack.c.bf16 %v2391_v26, %v2391_v26 }
 0x2ac   : > { %v2308_v62 = vpack.c.bf16 %v2292_v40, %v2292_v40 }
 0x2ad   : > { %v2240_v17 = vpop.f32.mrf.mxu2  ;;  %v2495_v10 = vunpack.c.l.b16 %v2407_v30 }
 0x2ae   : > { %v2258_v19 = vadd.f32 %v2240_v17, %v2028_v46  ;;  %v2371_v15 = vpop.f32.mrf.mxu3  ;;  %v2441_v9 = vunpack.c.l.b16 %v2308_v62 }
 0x2af   : > { %v2372_v52 = vadd.f32 %v2371_v15, %v4606_v23 }
 0x2b0   : > { %v2277_v22 = vadd.f32 %v4615_v36, %v2258_v19 }
 0x2b1   : > { %v2392_v55 = vmax.f32 %v2372_v52, 0.0  ;;  %2465 = vrot.lane.b32.xlu1 %v4356_v2, %s3284_s11  ;;  %s2813_s11 = sshll.u32 %s4864_s22, 5 }
 0x2b2   : > { %v2293_v35 = vmax.f32 %v2277_v22, 0.0 }
 0x2b3   : > { %v2408_v32 = vpack.c.bf16 %v2392_v55, %v2392_v55 }
 0x2b4   : > { %v2309_v44 = vpack.c.bf16 %v2293_v35, %v2293_v35 }
 0x2b5   : > { %v2496_v39 = vunpack.c.l.b16 %v2408_v32 }
 0x2b6   : > { %v2442_v37 = vunpack.c.l.b16 %v2309_v44  ;;  %v2374_v38 = vpop.f32.mrf.mxu3 }
 0x2b7   : > { %v2505_v43 = vpack.c.b16 %v2496_v39, %v2495_v10  ;;  %v2375_v63 = vadd.f32 %v2374_v38, %v4606_v23 }
 0x2b8   : > { %v2450_v61 = vpack.c.b16 %v2442_v37, %v2441_v9 }
 0x2b9   : > { %2519 = vrot.lane.b32.xlu0 %v2505_v43, %s3283_s29  ;;  %v2393_v36 = vmax.f32 %v2375_v63, 0.0 }
 0x2bb   : > { %v2409_v2 = vpack.c.bf16 %v2393_v36, %v2393_v36 }
 0x2bd   : > { %v2497_v41 = vunpack.c.l.b16 %v2409_v2 }
 0x2be   : > { %v2376_v21 = vpop.f32.mrf.mxu3 }
 0x2bf   : > { %v2377_v27 = vadd.f32 %v2376_v21, %v4606_v23 }
 0x2c1   : > { %v2394_v5 = vmax.f32 %v2377_v27, 0.0 }
 0x2c3   : > { %v2410_v14 = vpack.c.bf16 %v2394_v5, %v2394_v5  ;;  %v2510_v23 = vpop.permute.xlu2 %2509 }
 0x2c4   : > { %v2551_v25 = vsel %vm2547_vm8, %v2528_v28, %v2510_v23 }
 0x2c5   : > { %v2498_v60 = vunpack.c.l.b16 %v2410_v14 }
 0x2c7   : > { %v2506_v3 = vpack.c.b16 %v2498_v60, %v2497_v41 }
 0x2c9   : > { %2521 = vrot.lane.b32.xlu2 %v2506_v3, %s3283_s29  ;;  %s2812_s29 = sshll.u32 %s3264_s21, 4 }
 0x2ca   : > { %p282_p9 = scmp.lt.s32.totalorder %s2812_s29, 31 }
 0x2cb   : > { %v2508_v42 = vpop.permute.xlu0 %2507  ;;  %v2458_v6 = vpop.permute.xlu2 %2457 }
 0x2cc   : > { %v2549_v45 = vsel %vm2547_vm8, %v2525_v31, %v2508_v42  ;;  %v2534_v56 = vsel %vm645_vm3, %v4662_v11, %v2458_v6  ;;  %s4866_s29 = smov (!%p282_p9, %s2812_s29), 31 }
 0x2cd   : > { %3093 = vmatmul.msk.bf16.vlgmr.msra.gmra.mxu0 %vm2615_vm7, %v2549_v45  ;;  %s285_s10 = sadd.s32 %s2813_s11, %s4866_s29 }
 0x2ce   : > { %s2814_s13 = sshll.u32 %s285_s10, 2 }
 0x2cf   : > { %s4754_s17 = scalar_lea.vmem %s4785_s6, %s2814_s13 }
 0x2d3   : > { %v2456_v34 = vpop.permute.xlu0 %2455 }
 0x2d4   : > { %v2531_v18 = vsel %vm645_vm3, %v4648_v50, %v2456_v34 }
 0x2dd   : > { %3094 = vmatmul.msk.bf16.gmra.mxu0 %vm2615_vm7, %v2551_v25 }
 0x2eb   : > { %v2512_v54 = vpop.permute.xlu1 %2511 }
 0x2ec   : > { %v2553_v49 = vsel %vm2547_vm8, %v2531_v18, %v2512_v54 }
 0x2ed   : > { %3095 = vmatmul.msk.bf16.gmra.mxu0 %vm2615_vm7, %v2553_v49 }
 0x2f3   : > { %v2460_v53 = vpop.permute.xlu1 %2459  ;;  %v2516_v47 = vpop.permute.xlu2 %2515 }
 0x2f4   : > { %v2537_v4 = vsel %vm645_vm3, %v4673_v7, %v2460_v53 }
 0x2f5   : > { %v2557_v50 = vsel %vm2547_vm8, %v2537_v4, %v2516_v47 }
 0x2fb   : > { %v2514_v33 = vpop.permute.xlu0 %2513  ;;  %v2464_v16 = vpop.permute.xlu2 %2463 }
 0x2fc   : > { %v2555_v0 = vsel %vm2547_vm8, %v2534_v56, %v2514_v33  ;;  %v2543_v7 = vsel %vm645_vm3, %v4701_v29, %v2464_v16  ;;  %v3237_v29 = vld [vmem:[%s4784_s5] ss:$0 sm:$0xff] }
 0x2fd   : > { %3096 = vmatmul.msk.bf16.gmra.mxu0 %vm2615_vm7, %v2555_v0 }
 0x303   : > { %v2462_v58 = vpop.permute.xlu0 %2461 }
 0x304   : > { %v2540_v13 = vsel %vm645_vm3, %v4687_v48, %v2462_v58 }
 0x30d   : > { %3097 = vmatmul.msk.bf16.gmra.mxu0 %vm2615_vm7, %v2557_v50 }
 0x31b   : > { %v2518_v11 = vpop.permute.xlu1 %2517 }
 0x31c   : > { %v2559_v59 = vsel %vm2547_vm8, %v2540_v13, %v2518_v11 }
 0x31d   : > { %3098 = vmatmul.msk.bf16.gmra.mxu0 %vm2615_vm7, %v2559_v59 }
 0x323   : > { %v2466_v24 = vpop.permute.xlu1 %2465  ;;  %v2522_v1 = vpop.permute.xlu2 %2521 }
 0x324   : > { %v2546_v8 = vsel %vm645_vm3, %v2450_v61, %v2466_v24 }
 0x325   : > { %v2563_v48 = vsel %vm2547_vm8, %v2546_v8, %v2522_v1 }
 0x32b   : > { %v2520_v57 = vpop.permute.xlu0 %2519 }
 0x32c   : > { %v2561_v20 = vsel %vm2547_vm8, %v2543_v7, %v2520_v57 }
 0x32d   : > { %3099 = vmatmul.msk.bf16.gmra.mxu0 %vm2615_vm7, %v2561_v20 }
 0x33d   : > { %3100 = vmatmul.msk.bf16.gmra.mxu0 %vm2615_vm7, %v2563_v48 }
 0x34a   : > { %v2641_v46 = vpop.f32.mrf.mxu0 }
 0x34b   : > { %v2642_v17 = vadd.f32 %v3237_v29, %v2641_v46 }
 0x352   : > { %v2643_v26 = vpop.f32.mrf.mxu0 }
 0x353   : > { %v2644_v40 = vadd.f32 %v3237_v29, %v2643_v26 }
 0x355   : > { %v3144_v19 = vpack.c.bf16 %v2644_v40, %v2642_v17 }
 0x357   : > { %3145 = vst [vmem:[%s4754_s17] sm:$0xff] %v3144_v19  }
 0x35a   : > { %v2646_v15 = vpop.f32.mrf.mxu0 }
 0x35b   : > { %v2647_v22 = vadd.f32 %v3237_v29, %v2646_v15 }
 0x362   : > { %v2648_v52 = vpop.f32.mrf.mxu0 }
 0x363   : > { %v2649_v30 = vadd.f32 %v3237_v29, %v2648_v52 }
 0x365   : > { %v3149_v55 = vpack.c.bf16 %v2649_v30, %v2647_v22 }
 0x367   : > { %3181 = vst [vmem:[%s4754_s17 + $0x8] sm:$0xff] %v3149_v55  }
 0x36a   : > { %v2651_v62 = vpop.f32.mrf.mxu0 }
 0x36b   : > { %v2652_v32 = vadd.f32 %v3237_v29, %v2651_v62 }
 0x372   : > { %v2653_v35 = vpop.f32.mrf.mxu0 }
 0x373   : > { %v2654_v44 = vadd.f32 %v3237_v29, %v2653_v35 }
 0x375   : > { %v3154_v10 = vpack.c.bf16 %v2654_v44, %v2652_v32 }
 0x377   : > { %3182 = vst [vmem:[%s4754_s17 + $0x10] sm:$0xff] %v3154_v10  }
 0x37a   : > { %v2656_v39 = vpop.f32.mrf.mxu0 }
 0x37b   : > { %v2657_v37 = vadd.f32 %v3237_v29, %v2656_v39 }
 0x382   : > { %v2658_v9 = vpop.f32.mrf.mxu0 }
 0x383   : > { %v2659_v38 = vadd.f32 %v3237_v29, %v2658_v9 }
 0x385   : > { %v3159_v43 = vpack.c.bf16 %v2659_v38, %v2657_v37 }
 0x387   : > { %3183 = vst [vmem:[%s4754_s17 + $0x18] sm:$0xff] %v3159_v43  }
 0x38a   : > { %v2661_v61 = vpop.f32.mrf.mxu0 }
 0x38b   : > { %v2662_v36 = vadd.f32 %v3237_v29, %v2661_v61 }
 0x392   : > { %v2663_v63 = vpop.f32.mrf.mxu0 }
 0x393   : > { %v2664_v21 = vadd.f32 %v3237_v29, %v2663_v63 }
 0x395   : > { %v3164_v27 = vpack.c.bf16 %v2664_v21, %v2662_v36 }
 0x397   : > { %3184 = vst [vmem:[%s4754_s17 + $0x20] sm:$0xff] %v3164_v27  }
 0x39a   : > { %v2666_v2 = vpop.f32.mrf.mxu0 }
 0x39b   : > { %v2667_v14 = vadd.f32 %v3237_v29, %v2666_v2 }
 0x3a2   : > { %v2668_v5 = vpop.f32.mrf.mxu0 }
 0x3a3   : > { %v2669_v41 = vadd.f32 %v3237_v29, %v2668_v5 }
 0x3a5   : > { %v3169_v60 = vpack.c.bf16 %v2669_v41, %v2667_v14 }
 0x3a7   : > { %3185 = vst [vmem:[%s4754_s17 + $0x28] sm:$0xff] %v3169_v60  }
 0x3aa   : > { %v2671_v3 = vpop.f32.mrf.mxu0 }
 0x3ab   : > { %v2672_v42 = vadd.f32 %v3237_v29, %v2671_v3 }
 0x3b2   : > { %v2673_v12 = vpop.f32.mrf.mxu0 }
 0x3b3   : > { %v2674_v31 = vadd.f32 %v3237_v29, %v2673_v12 }
 0x3b5   : > { %v3174_v45 = vpack.c.bf16 %v2674_v31, %v2672_v42 }
 0x3b7   : > { %3186 = vst [vmem:[%s4754_s17 + $0x30] sm:$0xff] %v3174_v45  }
 0x3ba   : > { %v2676_v23 = vpop.f32.mrf.mxu0 }
 0x3bb   : > { %v2677_v28 = vadd.f32 %v3237_v29, %v2676_v23 }
 0x3c2   : > { %v2678_v51 = vpop.f32.mrf.mxu0 }
 0x3c3   : > { %v2679_v25 = vadd.f32 %v3237_v29, %v2678_v51 }
 0x3c5   : > { %v3179_v34 = vpack.c.bf16 %v2679_v25, %v2677_v28 }
 0x3c7   : > { %3187 = vst [vmem:[%s4754_s17 + $0x38] sm:$0xff] %v3179_v34  }
 0x3c8 PF: > { %s16_s25 = sadd.s32 1, %s3280_s25   ;;  %s4853_s21 = smov %s3272_s23 }
 0x3c9   : > { %p13_p10 = scmp.ge.s32.totalorder %s16_s25, 6   ;;  %s4854_s22 = smov %s3276_s24 }
 0x3ca   : > { %s4855_s23 = smov %s4858_s26  ;;  %s4856_s24 = smov %s4862_s27 }
 0x3cb   :  { %15 = sbr.rel (!%p13_p10) target bundleno = 3 (0x3), region = 83 }

</bundles_post_ra>
